<compile_context>
chip_gen: v5e
topology: v5e:2x2
jax: 0.10.0
libtpu: 0.0.40
codegen_flags: <defaults>
</compile_context>

<pallas_src>
import functools

import jax
import jax.numpy as jnp
from jax.experimental import pallas as pl
from jax.experimental.pallas import tpu as pltpu


# ---------------- configuration (mirrors BaseRNN.__init__ args) -------------
INPUT_SEQ_LEN   = 8      # input_seq_len
HIDDEN_DIM      = 32     # hidden_dim   (4H = 128 -> one full lane dim)
INPUT_DROPOUT_P = 0.1    # input_dropout_p
DROPOUT_P       = 0.0    # dropout_p (inter-layer; unused with n_layers=1)
N_LAYERS        = 1      # n_layers
RNN_CELL        = "lstm" # rnn_cell
INPUT_DIM       = 16     # feature dim of the input sequence
BATCH           = 2


# ------------------------------- kernel -------------------------------------
def _base_rnn_kernel(x_ref, mask_ref, wih_ref, whh_ref, b_ref,
                     out_ref, hn_ref, cn_ref, *, seq_len):
    B, T, D = x_ref.shape
    H = hn_ref.shape[1]

    # ---- input dropout (training semantics): x * keep_mask / (1 - p) ----
    # mask_ref already holds keep/(1-p); p == 0 -> all ones.
    x = x_ref[...].astype(jnp.float32) * mask_ref[...]

    # ---- hoisted input projection + bias: one MXU matmul for all timesteps ----
    gates_x = jnp.dot(x.reshape(B * T, D), wih_ref[...],
                      preferred_element_type=jnp.float32) + b_ref[...]
    gates_x = gates_x.reshape(B, T, 4 * H)                       # (B, T, 4H)

    whh = whh_ref[...]                                           # (H, 4H)

    h = jnp.zeros((B, H), jnp.float32)
    c = jnp.zeros((B, H), jnp.float32)

    # ---- fully-unrolled LSTM recurrence (PyTorch gate order i, f, g, o) ----
    for t in range(seq_len):                                     # static unroll
        gates = gates_x[:, t, :] + jnp.dot(h, whh,
                                           preferred_element_type=jnp.float32)
        # activations on the full 128-lane block, then slice
        sig = jax.nn.sigmoid(gates)
        tg = jnp.tanh(gates)
        i_g = sig[:, 0 * H:1 * H]
        f_g = sig[:, 1 * H:2 * H]
        g_g = tg[:, 2 * H:3 * H]
        o_g = sig[:, 3 * H:4 * H]
        c = f_g * c + i_g * g_g
        h = o_g * jnp.tanh(c)
        out_ref[:, t, :] = h.astype(out_ref.dtype)               # direct store

    hn_ref[...] = h.astype(hn_ref.dtype)
    cn_ref[...] = c.astype(cn_ref.dtype)


# ------------------------------- wrapper -------------------------------------
def base_rnn_forward(x, params, seed):
    """x: [B, T, D] float32. Returns (outputs [B,T,H], h_n [1,B,H], c_n [1,B,H])."""
    B, T, D = x.shape
    H = params["w_hh"].shape[1]

    wih_t = jnp.transpose(params["w_ih"])                    # (D, 4H)
    whh_t = jnp.transpose(params["w_hh"])                    # (H, 4H)
    bias = (params["b_ih"] + params["b_hh"]).reshape(1, 4 * H)

    # input dropout keep-mask, pre-scaled by 1/(1-p)
    if INPUT_DROPOUT_P > 0.0:
        keep_prob = 1.0 - INPUT_DROPOUT_P
        keep = jax.random.bernoulli(jax.random.PRNGKey(seed), keep_prob, x.shape)
        mask = keep.astype(jnp.float32) * (1.0 / keep_prob)
    else:
        mask = jnp.ones_like(x, dtype=jnp.float32)

    kernel = functools.partial(_base_rnn_kernel, seq_len=T)

    out, h_n, c_n = pl.pallas_call(
        kernel,
        out_shape=(
            jax.ShapeDtypeStruct((B, T, H), jnp.float32),
            jax.ShapeDtypeStruct((B, H), jnp.float32),
            jax.ShapeDtypeStruct((B, H), jnp.float32),
        ),
        in_specs=[
            pl.BlockSpec(memory_space=pltpu.MemorySpace.VMEM),   # x
            pl.BlockSpec(memory_space=pltpu.MemorySpace.VMEM),   # dropout mask
            pl.BlockSpec(memory_space=pltpu.MemorySpace.VMEM),   # W_ih^T
            pl.BlockSpec(memory_space=pltpu.MemorySpace.VMEM),   # W_hh^T
            pl.BlockSpec(memory_space=pltpu.MemorySpace.VMEM),   # bias
        ],
        out_specs=(
            pl.BlockSpec(memory_space=pltpu.MemorySpace.VMEM),
            pl.BlockSpec(memory_space=pltpu.MemorySpace.VMEM),
            pl.BlockSpec(memory_space=pltpu.MemorySpace.VMEM),
        ),
    )(x, mask, wih_t, whh_t, bias)

    # PyTorch nn.LSTM returns h_n/c_n with a leading (n_layers,) axis.
    return out, h_n[None, :, :], c_n[None, :, :]


def init_params(key, input_dim, hidden_dim):
    """Deterministic init matching nn.LSTM's U(-1/sqrt(H), 1/sqrt(H))."""
    k = 1.0 / jnp.sqrt(jnp.float32(hidden_dim))
    ks = jax.random.split(key, 4)
    return {
        "w_ih": jax.random.uniform(ks[0], (4 * hidden_dim, input_dim),
                                   jnp.float32, -k, k),
        "w_hh": jax.random.uniform(ks[1], (4 * hidden_dim, hidden_dim),
                                   jnp.float32, -k, k),
        "b_ih": jax.random.uniform(ks[2], (4 * hidden_dim,), jnp.float32, -k, k),
        "b_hh": jax.random.uniform(ks[3], (4 * hidden_dim,), jnp.float32, -k, k),
    }


if __name__ == "__main__":
    root = jax.random.PRNGKey(0)
    k_param, k_x = jax.random.split(root)

    params = init_params(k_param, INPUT_DIM, HIDDEN_DIM)
    x = jax.random.normal(k_x, (BATCH, INPUT_SEQ_LEN, INPUT_DIM), jnp.float32)

    out, h_n, c_n = base_rnn_forward(x, params, seed=0)
    jax.block_until_ready((out, h_n, c_n))

    assert out.shape == (BATCH, INPUT_SEQ_LEN, HIDDEN_DIM)
    assert h_n.shape == (N_LAYERS, BATCH, HIDDEN_DIM)
    assert c_n.shape == (N_LAYERS, BATCH, HIDDEN_DIM)
    assert bool(jnp.all(jnp.isfinite(out)))
    print("KERNEL_OK")
</pallas_src>

<mosaic_0001>
module attributes {stable_mosaic.version = 11 : i64} {
  func.func @_base_rnn_kernel(%arg0: memref<2x8x16xf32, #tpu.memory_space<vmem>>, %arg1: memref<2x8x16xf32, #tpu.memory_space<vmem>>, %arg2: memref<16x128xf32, #tpu.memory_space<vmem>>, %arg3: memref<32x128xf32, #tpu.memory_space<vmem>>, %arg4: memref<1x128xf32, #tpu.memory_space<vmem>>, %arg5: memref<2x8x32xf32, #tpu.memory_space<vmem>>, %arg6: memref<2x32xf32, #tpu.memory_space<vmem>>, %arg7: memref<2x32xf32, #tpu.memory_space<vmem>>) attributes {dimension_semantics = [], scalar_prefetch = 0 : i64, scratch_operands = 0 : i64, tpu.core_type = #tpu.core_type<tc>} {
    %c0 = arith.constant 0 : index
    %c0_0 = arith.constant 0 : index
    %c0_1 = arith.constant 0 : index
    %0 = vector.load %arg0[%c0, %c0_0, %c0_1] : memref<2x8x16xf32, #tpu.memory_space<vmem>>, vector<2x8x16xf32>
    %c0_2 = arith.constant 0 : index
    %c0_3 = arith.constant 0 : index
    %c0_4 = arith.constant 0 : index
    %1 = vector.load %arg1[%c0_2, %c0_3, %c0_4] : memref<2x8x16xf32, #tpu.memory_space<vmem>>, vector<2x8x16xf32>
    %2 = arith.mulf %0, %1 : vector<2x8x16xf32>
    %3 = vector.shape_cast %2 : vector<2x8x16xf32> to vector<16x16xf32>
    %c0_5 = arith.constant 0 : index
    %c0_6 = arith.constant 0 : index
    %4 = vector.load %arg2[%c0_5, %c0_6] : memref<16x128xf32, #tpu.memory_space<vmem>>, vector<16x128xf32>
    %cst = arith.constant dense<0.000000e+00> : vector<16x128xf32>
    %5 = tpu.matmul %3, %4, %cst {dimension_numbers = #tpu.dot_dimension_numbers<[1], [0], [0], [1], [0, 0, 1, 1], [], []>} : vector<16x16xf32>, vector<16x128xf32>, vector<16x128xf32> -> vector<16x128xf32>
    %c0_7 = arith.constant 0 : index
    %c0_8 = arith.constant 0 : index
    %6 = vector.load %arg4[%c0_7, %c0_8] : memref<1x128xf32, #tpu.memory_space<vmem>>, vector<1x128xf32>
    %7 = vector.broadcast %6 : vector<1x128xf32> to vector<16x128xf32>
    %8 = arith.addf %5, %7 : vector<16x128xf32>
    %9 = vector.shape_cast %8 : vector<16x128xf32> to vector<2x8x128xf32>
    %c0_9 = arith.constant 0 : index
    %c0_10 = arith.constant 0 : index
    %10 = vector.load %arg3[%c0_9, %c0_10] : memref<32x128xf32, #tpu.memory_space<vmem>>, vector<32x128xf32>
    %cst_11 = arith.constant 0.000000e+00 : f32
    %11 = vector.broadcast %cst_11 : f32 to vector<2x32xf32>
    %cst_12 = arith.constant 0.000000e+00 : f32
    %12 = vector.broadcast %cst_12 : f32 to vector<2x32xf32>
    %13 = vector.extract_strided_slice %9 {offsets = [0, 0, 0], sizes = [2, 1, 128], strides = [1, 1, 1]} : vector<2x8x128xf32> to vector<2x1x128xf32>
    %14 = vector.shape_cast %13 : vector<2x1x128xf32> to vector<2x128xf32>
    %cst_13 = arith.constant dense<0.000000e+00> : vector<2x128xf32>
    %15 = tpu.matmul %11, %10, %cst_13 {dimension_numbers = #tpu.dot_dimension_numbers<[1], [0], [0], [1], [0, 0, 1, 1], [], []>} : vector<2x32xf32>, vector<32x128xf32>, vector<2x128xf32> -> vector<2x128xf32>
    %16 = arith.addf %14, %15 : vector<2x128xf32>
    %17 = arith.negf %16 : vector<2x128xf32>
    %18 = math.exp %17 : vector<2x128xf32>
    %cst_14 = arith.constant 1.000000e+00 : f32
    %19 = vector.broadcast %cst_14 : f32 to vector<2x128xf32>
    %20 = arith.addf %19, %18 : vector<2x128xf32>
    %21 = arith.divf %19, %20 : vector<2x128xf32>
    %22 = math.tanh %16 : vector<2x128xf32>
    %23 = vector.extract_strided_slice %21 {offsets = [0, 0], sizes = [2, 32], strides = [1, 1]} : vector<2x128xf32> to vector<2x32xf32>
    %24 = vector.extract_strided_slice %21 {offsets = [0, 32], sizes = [2, 32], strides = [1, 1]} : vector<2x128xf32> to vector<2x32xf32>
    %25 = vector.extract_strided_slice %22 {offsets = [0, 64], sizes = [2, 32], strides = [1, 1]} : vector<2x128xf32> to vector<2x32xf32>
    %26 = vector.extract_strided_slice %21 {offsets = [0, 96], sizes = [2, 32], strides = [1, 1]} : vector<2x128xf32> to vector<2x32xf32>
    %27 = arith.mulf %24, %12 : vector<2x32xf32>
    %28 = arith.mulf %23, %25 : vector<2x32xf32>
    %29 = arith.addf %27, %28 : vector<2x32xf32>
    %30 = math.tanh %29 : vector<2x32xf32>
    %31 = arith.mulf %26, %30 : vector<2x32xf32>
    %c0_15 = arith.constant 0 : index
    %c0_16 = arith.constant 0 : index
    %c0_17 = arith.constant 0 : index
    %32 = vector.load %arg5[%c0_15, %c0_16, %c0_17] : memref<2x8x32xf32, #tpu.memory_space<vmem>>, vector<2x1x32xf32>
    %33 = vector.shape_cast %32 : vector<2x1x32xf32> to vector<2x32xf32>
    %34 = vector.shape_cast %31 : vector<2x32xf32> to vector<2x1x32xf32>
    tpu.vector_store %arg5[%c0_15, %c0_16, %c0_17], %34 {strides = array<i32>} : memref<2x8x32xf32, #tpu.memory_space<vmem>>, vector<2x1x32xf32>,
    %35 = vector.extract_strided_slice %9 {offsets = [0, 1, 0], sizes = [2, 1, 128], strides = [1, 1, 1]} : vector<2x8x128xf32> to vector<2x1x128xf32>
    %36 = vector.shape_cast %35 : vector<2x1x128xf32> to vector<2x128xf32>
    %cst_18 = arith.constant dense<0.000000e+00> : vector<2x128xf32>
    %37 = tpu.matmul %31, %10, %cst_18 {dimension_numbers = #tpu.dot_dimension_numbers<[1], [0], [0], [1], [0, 0, 1, 1], [], []>} : vector<2x32xf32>, vector<32x128xf32>, vector<2x128xf32> -> vector<2x128xf32>
    %38 = arith.addf %36, %37 : vector<2x128xf32>
    %39 = arith.negf %38 : vector<2x128xf32>
    %40 = math.exp %39 : vector<2x128xf32>
    %cst_19 = arith.constant 1.000000e+00 : f32
    %41 = vector.broadcast %cst_19 : f32 to vector<2x128xf32>
    %42 = arith.addf %41, %40 : vector<2x128xf32>
    %43 = arith.divf %41, %42 : vector<2x128xf32>
    %44 = math.tanh %38 : vector<2x128xf32>
    %45 = vector.extract_strided_slice %43 {offsets = [0, 0], sizes = [2, 32], strides = [1, 1]} : vector<2x128xf32> to vector<2x32xf32>
    %46 = vector.extract_strided_slice %43 {offsets = [0, 32], sizes = [2, 32], strides = [1, 1]} : vector<2x128xf32> to vector<2x32xf32>
    %47 = vector.extract_strided_slice %44 {offsets = [0, 64], sizes = [2, 32], strides = [1, 1]} : vector<2x128xf32> to vector<2x32xf32>
    %48 = vector.extract_strided_slice %43 {offsets = [0, 96], sizes = [2, 32], strides = [1, 1]} : vector<2x128xf32> to vector<2x32xf32>
    %49 = arith.mulf %46, %29 : vector<2x32xf32>
    %50 = arith.mulf %45, %47 : vector<2x32xf32>
    %51 = arith.addf %49, %50 : vector<2x32xf32>
    %52 = math.tanh %51 : vector<2x32xf32>
    %53 = arith.mulf %48, %52 : vector<2x32xf32>
    %c0_20 = arith.constant 0 : index
    %c1 = arith.constant 1 : index
    %c0_21 = arith.constant 0 : index
    %54 = vector.load %arg5[%c0_20, %c1, %c0_21] : memref<2x8x32xf32, #tpu.memory_space<vmem>>, vector<2x1x32xf32>
    %55 = vector.shape_cast %54 : vector<2x1x32xf32> to vector<2x32xf32>
    %56 = vector.shape_cast %53 : vector<2x32xf32> to vector<2x1x32xf32>
    tpu.vector_store %arg5[%c0_20, %c1, %c0_21], %56 {strides = array<i32>} : memref<2x8x32xf32, #tpu.memory_space<vmem>>, vector<2x1x32xf32>,
    %57 = vector.extract_strided_slice %9 {offsets = [0, 2, 0], sizes = [2, 1, 128], strides = [1, 1, 1]} : vector<2x8x128xf32> to vector<2x1x128xf32>
    %58 = vector.shape_cast %57 : vector<2x1x128xf32> to vector<2x128xf32>
    %cst_22 = arith.constant dense<0.000000e+00> : vector<2x128xf32>
    %59 = tpu.matmul %53, %10, %cst_22 {dimension_numbers = #tpu.dot_dimension_numbers<[1], [0], [0], [1], [0, 0, 1, 1], [], []>} : vector<2x32xf32>, vector<32x128xf32>, vector<2x128xf32> -> vector<2x128xf32>
    %60 = arith.addf %58, %59 : vector<2x128xf32>
    %61 = arith.negf %60 : vector<2x128xf32>
    %62 = math.exp %61 : vector<2x128xf32>
    %cst_23 = arith.constant 1.000000e+00 : f32
    %63 = vector.broadcast %cst_23 : f32 to vector<2x128xf32>
    %64 = arith.addf %63, %62 : vector<2x128xf32>
    %65 = arith.divf %63, %64 : vector<2x128xf32>
    %66 = math.tanh %60 : vector<2x128xf32>
    %67 = vector.extract_strided_slice %65 {offsets = [0, 0], sizes = [2, 32], strides = [1, 1]} : vector<2x128xf32> to vector<2x32xf32>
    %68 = vector.extract_strided_slice %65 {offsets = [0, 32], sizes = [2, 32], strides = [1, 1]} : vector<2x128xf32> to vector<2x32xf32>
    %69 = vector.extract_strided_slice %66 {offsets = [0, 64], sizes = [2, 32], strides = [1, 1]} : vector<2x128xf32> to vector<2x32xf32>
    %70 = vector.extract_strided_slice %65 {offsets = [0, 96], sizes = [2, 32], strides = [1, 1]} : vector<2x128xf32> to vector<2x32xf32>
    %71 = arith.mulf %68, %51 : vector<2x32xf32>
    %72 = arith.mulf %67, %69 : vector<2x32xf32>
    %73 = arith.addf %71, %72 : vector<2x32xf32>
    %74 = math.tanh %73 : vector<2x32xf32>
    %75 = arith.mulf %70, %74 : vector<2x32xf32>
    %c0_24 = arith.constant 0 : index
    %c2 = arith.constant 2 : index
    %c0_25 = arith.constant 0 : index
    %76 = vector.load %arg5[%c0_24, %c2, %c0_25] : memref<2x8x32xf32, #tpu.memory_space<vmem>>, vector<2x1x32xf32>
    %77 = vector.shape_cast %76 : vector<2x1x32xf32> to vector<2x32xf32>
    %78 = vector.shape_cast %75 : vector<2x32xf32> to vector<2x1x32xf32>
    tpu.vector_store %arg5[%c0_24, %c2, %c0_25], %78 {strides = array<i32>} : memref<2x8x32xf32, #tpu.memory_space<vmem>>, vector<2x1x32xf32>,
    %79 = vector.extract_strided_slice %9 {offsets = [0, 3, 0], sizes = [2, 1, 128], strides = [1, 1, 1]} : vector<2x8x128xf32> to vector<2x1x128xf32>
    %80 = vector.shape_cast %79 : vector<2x1x128xf32> to vector<2x128xf32>
    %cst_26 = arith.constant dense<0.000000e+00> : vector<2x128xf32>
    %81 = tpu.matmul %75, %10, %cst_26 {dimension_numbers = #tpu.dot_dimension_numbers<[1], [0], [0], [1], [0, 0, 1, 1], [], []>} : vector<2x32xf32>, vector<32x128xf32>, vector<2x128xf32> -> vector<2x128xf32>
    %82 = arith.addf %80, %81 : vector<2x128xf32>
    %83 = arith.negf %82 : vector<2x128xf32>
    %84 = math.exp %83 : vector<2x128xf32>
    %cst_27 = arith.constant 1.000000e+00 : f32
    %85 = vector.broadcast %cst_27 : f32 to vector<2x128xf32>
    %86 = arith.addf %85, %84 : vector<2x128xf32>
    %87 = arith.divf %85, %86 : vector<2x128xf32>
    %88 = math.tanh %82 : vector<2x128xf32>
    %89 = vector.extract_strided_slice %87 {offsets = [0, 0], sizes = [2, 32], strides = [1, 1]} : vector<2x128xf32> to vector<2x32xf32>
    %90 = vector.extract_strided_slice %87 {offsets = [0, 32], sizes = [2, 32], strides = [1, 1]} : vector<2x128xf32> to vector<2x32xf32>
    %91 = vector.extract_strided_slice %88 {offsets = [0, 64], sizes = [2, 32], strides = [1, 1]} : vector<2x128xf32> to vector<2x32xf32>
    %92 = vector.extract_strided_slice %87 {offsets = [0, 96], sizes = [2, 32], strides = [1, 1]} : vector<2x128xf32> to vector<2x32xf32>
    %93 = arith.mulf %90, %73 : vector<2x32xf32>
    %94 = arith.mulf %89, %91 : vector<2x32xf32>
    %95 = arith.addf %93, %94 : vector<2x32xf32>
    %96 = math.tanh %95 : vector<2x32xf32>
    %97 = arith.mulf %92, %96 : vector<2x32xf32>
    %c0_28 = arith.constant 0 : index
    %c3 = arith.constant 3 : index
    %c0_29 = arith.constant 0 : index
    %98 = vector.load %arg5[%c0_28, %c3, %c0_29] : memref<2x8x32xf32, #tpu.memory_space<vmem>>, vector<2x1x32xf32>
    %99 = vector.shape_cast %98 : vector<2x1x32xf32> to vector<2x32xf32>
    %100 = vector.shape_cast %97 : vector<2x32xf32> to vector<2x1x32xf32>
    tpu.vector_store %arg5[%c0_28, %c3, %c0_29], %100 {strides = array<i32>} : memref<2x8x32xf32, #tpu.memory_space<vmem>>, vector<2x1x32xf32>,
    %101 = vector.extract_strided_slice %9 {offsets = [0, 4, 0], sizes = [2, 1, 128], strides = [1, 1, 1]} : vector<2x8x128xf32> to vector<2x1x128xf32>
    %102 = vector.shape_cast %101 : vector<2x1x128xf32> to vector<2x128xf32>
    %cst_30 = arith.constant dense<0.000000e+00> : vector<2x128xf32>
    %103 = tpu.matmul %97, %10, %cst_30 {dimension_numbers = #tpu.dot_dimension_numbers<[1], [0], [0], [1], [0, 0, 1, 1], [], []>} : vector<2x32xf32>, vector<32x128xf32>, vector<2x128xf32> -> vector<2x128xf32>
    %104 = arith.addf %102, %103 : vector<2x128xf32>
    %105 = arith.negf %104 : vector<2x128xf32>
    %106 = math.exp %105 : vector<2x128xf32>
    %cst_31 = arith.constant 1.000000e+00 : f32
    %107 = vector.broadcast %cst_31 : f32 to vector<2x128xf32>
    %108 = arith.addf %107, %106 : vector<2x128xf32>
    %109 = arith.divf %107, %108 : vector<2x128xf32>
    %110 = math.tanh %104 : vector<2x128xf32>
    %111 = vector.extract_strided_slice %109 {offsets = [0, 0], sizes = [2, 32], strides = [1, 1]} : vector<2x128xf32> to vector<2x32xf32>
    %112 = vector.extract_strided_slice %109 {offsets = [0, 32], sizes = [2, 32], strides = [1, 1]} : vector<2x128xf32> to vector<2x32xf32>
    %113 = vector.extract_strided_slice %110 {offsets = [0, 64], sizes = [2, 32], strides = [1, 1]} : vector<2x128xf32> to vector<2x32xf32>
    %114 = vector.extract_strided_slice %109 {offsets = [0, 96], sizes = [2, 32], strides = [1, 1]} : vector<2x128xf32> to vector<2x32xf32>
    %115 = arith.mulf %112, %95 : vector<2x32xf32>
    %116 = arith.mulf %111, %113 : vector<2x32xf32>
    %117 = arith.addf %115, %116 : vector<2x32xf32>
    %118 = math.tanh %117 : vector<2x32xf32>
    %119 = arith.mulf %114, %118 : vector<2x32xf32>
    %c0_32 = arith.constant 0 : index
    %c4 = arith.constant 4 : index
    %c0_33 = arith.constant 0 : index
    %120 = vector.load %arg5[%c0_32, %c4, %c0_33] : memref<2x8x32xf32, #tpu.memory_space<vmem>>, vector<2x1x32xf32>
    %121 = vector.shape_cast %120 : vector<2x1x32xf32> to vector<2x32xf32>
    %122 = vector.shape_cast %119 : vector<2x32xf32> to vector<2x1x32xf32>
    tpu.vector_store %arg5[%c0_32, %c4, %c0_33], %122 {strides = array<i32>} : memref<2x8x32xf32, #tpu.memory_space<vmem>>, vector<2x1x32xf32>,
    %123 = vector.extract_strided_slice %9 {offsets = [0, 5, 0], sizes = [2, 1, 128], strides = [1, 1, 1]} : vector<2x8x128xf32> to vector<2x1x128xf32>
    %124 = vector.shape_cast %123 : vector<2x1x128xf32> to vector<2x128xf32>
    %cst_34 = arith.constant dense<0.000000e+00> : vector<2x128xf32>
    %125 = tpu.matmul %119, %10, %cst_34 {dimension_numbers = #tpu.dot_dimension_numbers<[1], [0], [0], [1], [0, 0, 1, 1], [], []>} : vector<2x32xf32>, vector<32x128xf32>, vector<2x128xf32> -> vector<2x128xf32>
    %126 = arith.addf %124, %125 : vector<2x128xf32>
    %127 = arith.negf %126 : vector<2x128xf32>
    %128 = math.exp %127 : vector<2x128xf32>
    %cst_35 = arith.constant 1.000000e+00 : f32
    %129 = vector.broadcast %cst_35 : f32 to vector<2x128xf32>
    %130 = arith.addf %129, %128 : vector<2x128xf32>
    %131 = arith.divf %129, %130 : vector<2x128xf32>
    %132 = math.tanh %126 : vector<2x128xf32>
    %133 = vector.extract_strided_slice %131 {offsets = [0, 0], sizes = [2, 32], strides = [1, 1]} : vector<2x128xf32> to vector<2x32xf32>
    %134 = vector.extract_strided_slice %131 {offsets = [0, 32], sizes = [2, 32], strides = [1, 1]} : vector<2x128xf32> to vector<2x32xf32>
    %135 = vector.extract_strided_slice %132 {offsets = [0, 64], sizes = [2, 32], strides = [1, 1]} : vector<2x128xf32> to vector<2x32xf32>
    %136 = vector.extract_strided_slice %131 {offsets = [0, 96], sizes = [2, 32], strides = [1, 1]} : vector<2x128xf32> to vector<2x32xf32>
    %137 = arith.mulf %134, %117 : vector<2x32xf32>
    %138 = arith.mulf %133, %135 : vector<2x32xf32>
    %139 = arith.addf %137, %138 : vector<2x32xf32>
    %140 = math.tanh %139 : vector<2x32xf32>
    %141 = arith.mulf %136, %140 : vector<2x32xf32>
    %c0_36 = arith.constant 0 : index
    %c5 = arith.constant 5 : index
    %c0_37 = arith.constant 0 : index
    %142 = vector.load %arg5[%c0_36, %c5, %c0_37] : memref<2x8x32xf32, #tpu.memory_space<vmem>>, vector<2x1x32xf32>
    %143 = vector.shape_cast %142 : vector<2x1x32xf32> to vector<2x32xf32>
    %144 = vector.shape_cast %141 : vector<2x32xf32> to vector<2x1x32xf32>
    tpu.vector_store %arg5[%c0_36, %c5, %c0_37], %144 {strides = array<i32>} : memref<2x8x32xf32, #tpu.memory_space<vmem>>, vector<2x1x32xf32>,
    %145 = vector.extract_strided_slice %9 {offsets = [0, 6, 0], sizes = [2, 1, 128], strides = [1, 1, 1]} : vector<2x8x128xf32> to vector<2x1x128xf32>
    %146 = vector.shape_cast %145 : vector<2x1x128xf32> to vector<2x128xf32>
    %cst_38 = arith.constant dense<0.000000e+00> : vector<2x128xf32>
    %147 = tpu.matmul %141, %10, %cst_38 {dimension_numbers = #tpu.dot_dimension_numbers<[1], [0], [0], [1], [0, 0, 1, 1], [], []>} : vector<2x32xf32>, vector<32x128xf32>, vector<2x128xf32> -> vector<2x128xf32>
    %148 = arith.addf %146, %147 : vector<2x128xf32>
    %149 = arith.negf %148 : vector<2x128xf32>
    %150 = math.exp %149 : vector<2x128xf32>
    %cst_39 = arith.constant 1.000000e+00 : f32
    %151 = vector.broadcast %cst_39 : f32 to vector<2x128xf32>
    %152 = arith.addf %151, %150 : vector<2x128xf32>
    %153 = arith.divf %151, %152 : vector<2x128xf32>
    %154 = math.tanh %148 : vector<2x128xf32>
    %155 = vector.extract_strided_slice %153 {offsets = [0, 0], sizes = [2, 32], strides = [1, 1]} : vector<2x128xf32> to vector<2x32xf32>
    %156 = vector.extract_strided_slice %153 {offsets = [0, 32], sizes = [2, 32], strides = [1, 1]} : vector<2x128xf32> to vector<2x32xf32>
    %157 = vector.extract_strided_slice %154 {offsets = [0, 64], sizes = [2, 32], strides = [1, 1]} : vector<2x128xf32> to vector<2x32xf32>
    %158 = vector.extract_strided_slice %153 {offsets = [0, 96], sizes = [2, 32], strides = [1, 1]} : vector<2x128xf32> to vector<2x32xf32>
    %159 = arith.mulf %156, %139 : vector<2x32xf32>
    %160 = arith.mulf %155, %157 : vector<2x32xf32>
    %161 = arith.addf %159, %160 : vector<2x32xf32>
    %162 = math.tanh %161 : vector<2x32xf32>
    %163 = arith.mulf %158, %162 : vector<2x32xf32>
    %c0_40 = arith.constant 0 : index
    %c6 = arith.constant 6 : index
    %c0_41 = arith.constant 0 : index
    %164 = vector.load %arg5[%c0_40, %c6, %c0_41] : memref<2x8x32xf32, #tpu.memory_space<vmem>>, vector<2x1x32xf32>
    %165 = vector.shape_cast %164 : vector<2x1x32xf32> to vector<2x32xf32>
    %166 = vector.shape_cast %163 : vector<2x32xf32> to vector<2x1x32xf32>
    tpu.vector_store %arg5[%c0_40, %c6, %c0_41], %166 {strides = array<i32>} : memref<2x8x32xf32, #tpu.memory_space<vmem>>, vector<2x1x32xf32>,
    %167 = vector.extract_strided_slice %9 {offsets = [0, 7, 0], sizes = [2, 1, 128], strides = [1, 1, 1]} : vector<2x8x128xf32> to vector<2x1x128xf32>
    %168 = vector.shape_cast %167 : vector<2x1x128xf32> to vector<2x128xf32>
    %cst_42 = arith.constant dense<0.000000e+00> : vector<2x128xf32>
    %169 = tpu.matmul %163, %10, %cst_42 {dimension_numbers = #tpu.dot_dimension_numbers<[1], [0], [0], [1], [0, 0, 1, 1], [], []>} : vector<2x32xf32>, vector<32x128xf32>, vector<2x128xf32> -> vector<2x128xf32>
    %170 = arith.addf %168, %169 : vector<2x128xf32>
    %171 = arith.negf %170 : vector<2x128xf32>
    %172 = math.exp %171 : vector<2x128xf32>
    %cst_43 = arith.constant 1.000000e+00 : f32
    %173 = vector.broadcast %cst_43 : f32 to vector<2x128xf32>
    %174 = arith.addf %173, %172 : vector<2x128xf32>
    %175 = arith.divf %173, %174 : vector<2x128xf32>
    %176 = math.tanh %170 : vector<2x128xf32>
    %177 = vector.extract_strided_slice %175 {offsets = [0, 0], sizes = [2, 32], strides = [1, 1]} : vector<2x128xf32> to vector<2x32xf32>
    %178 = vector.extract_strided_slice %175 {offsets = [0, 32], sizes = [2, 32], strides = [1, 1]} : vector<2x128xf32> to vector<2x32xf32>
    %179 = vector.extract_strided_slice %176 {offsets = [0, 64], sizes = [2, 32], strides = [1, 1]} : vector<2x128xf32> to vector<2x32xf32>
    %180 = vector.extract_strided_slice %175 {offsets = [0, 96], sizes = [2, 32], strides = [1, 1]} : vector<2x128xf32> to vector<2x32xf32>
    %181 = arith.mulf %178, %161 : vector<2x32xf32>
    %182 = arith.mulf %177, %179 : vector<2x32xf32>
    %183 = arith.addf %181, %182 : vector<2x32xf32>
    %184 = math.tanh %183 : vector<2x32xf32>
    %185 = arith.mulf %180, %184 : vector<2x32xf32>
    %c0_44 = arith.constant 0 : index
    %c7 = arith.constant 7 : index
    %c0_45 = arith.constant 0 : index
    %186 = vector.load %arg5[%c0_44, %c7, %c0_45] : memref<2x8x32xf32, #tpu.memory_space<vmem>>, vector<2x1x32xf32>
    %187 = vector.shape_cast %186 : vector<2x1x32xf32> to vector<2x32xf32>
    %188 = vector.shape_cast %185 : vector<2x32xf32> to vector<2x1x32xf32>
    tpu.vector_store %arg5[%c0_44, %c7, %c0_45], %188 {strides = array<i32>} : memref<2x8x32xf32, #tpu.memory_space<vmem>>, vector<2x1x32xf32>,
    %c0_46 = arith.constant 0 : index
    %c0_47 = arith.constant 0 : index
    %189 = vector.load %arg6[%c0_46, %c0_47] : memref<2x32xf32, #tpu.memory_space<vmem>>, vector<2x32xf32>
    tpu.vector_store %arg6[%c0_46, %c0_47], %185 {strides = array<i32>} : memref<2x32xf32, #tpu.memory_space<vmem>>, vector<2x32xf32>,
    %c0_48 = arith.constant 0 : index
    %c0_49 = arith.constant 0 : index
    %190 = vector.load %arg7[%c0_48, %c0_49] : memref<2x32xf32, #tpu.memory_space<vmem>>, vector<2x32xf32>
    tpu.vector_store %arg7[%c0_48, %c0_49], %183 {strides = array<i32>} : memref<2x32xf32, #tpu.memory_space<vmem>>, vector<2x32xf32>,
    return
  }
}

</mosaic_0001>

<bundles_post_ra>
// kernel: tpu_custom_call.1
= control target key start
LH: loop header
LB: loop body
LE: loop exit
PB: predicated region body
PF: predicated region fallthrough
CT: control target
= control target key end

     0   :  { %13 = vsyncpa [#allocation3], 0  ;;  %s1869_s0 = inlined_call_operand.hbm [shape: f32[2,8,16], index: 0, kind: input, shape index: {}]   ;;  %s1870_s1 = inlined_call_operand.hbm [shape: f32[2,8,16], index: 1, kind: input, shape index: {}]   ;;  %s1871_s2 = inlined_call_operand.hbm [shape: f32[16,128], index: 2, kind: input, shape index: {}]   ;;  %s1872_s3 = inlined_call_operand.hbm [shape: f32[32,128], index: 3, kind: input, shape index: {}]   ;;  %s1873_s4 = inlined_call_operand.vmem [shape: f32[1,128], index: 4, kind: input, shape index: {}]   ;;  %s1874_s5 = inlined_call_operand.hbm [shape: f32[2,8,32], index: 5, kind: output, shape index: {0}]   ;;  %s1875_s6 = inlined_call_operand.hbm [shape: f32[2,32], index: 6, kind: output, shape index: {1}]   ;;  %s1876_s7 = inlined_call_operand.hbm [shape: f32[2,32], index: 7, kind: output, shape index: {2}]  }
   0x1   :  { %14 = vsyncpa [#allocation6], 0 }
   0x2   :  { %15 = vsyncpa [#allocation9], 0 }
   0x3   :  { %16 = vsyncpa [#allocation4], 0 }
   0x4   :  { %17 = vsyncpa [#allocation12], 0  ;;  %s35_s26 = sshll.u32 %s1870_s1, 4  ;;  %s1536_s27 = smov [#allocation5]   ;;  %s36_s26 = int_to_ptr.hbm [resolvable:$true] %s35_s26 }
   0x5   :  { %s37_s28 = sshll.u32 %s1536_s27, 4  ;;  %s22_s8 = sshll.u32 %s1869_s0, 4  ;;  %s38_s28 = int_to_ptr.vmem [resolvable:$true] %s37_s28  ;;  %s23_s8 = int_to_ptr.hbm [resolvable:$true] %s22_s8 }
   0x6   :  { %s1537_s9 = smov 128   ;;  %s1538_s10 = smov 8  }
   0x7   :  { %43 = dma.hbm_to_vmem [thread:$0]  %s36_s26, 256, %s38_s28, [#allocation6], %s1537_s9, %s1537_s9, %s1538_s10  }
   0x8   :  { %s1539_s11 = smov [#allocation2]   ;;  %s48_s1 = sshll.u32 %s1871_s2, 4  ;;  %s49_s1 = int_to_ptr.hbm [resolvable:$true] %s48_s1 }
   0x9   :  { %s24_s12 = sshll.u32 %s1539_s11, 4  ;;  %s61_s16 = sshll.u32 %s1872_s3, 4  ;;  %s25_s12 = int_to_ptr.vmem [resolvable:$true] %s24_s12  ;;  %s62_s16 = int_to_ptr.hbm [resolvable:$true] %s61_s16 }
   0xa   :  { %30 = dma.hbm_to_vmem [thread:$0]  %s23_s8, 256, %s25_s12, [#allocation3], %s1537_s9, %s1537_s9, %s1538_s10  }
   0xb   :  { %s1540_s17 = smov [#allocation7]   ;;  %s1541_s19 = smov [#allocation8]  }
   0xc   :  { %s50_s18 = sshll.u32 %s1540_s17, 4  ;;  %s63_s2 = sshll.u32 %s1541_s19, 4  ;;  %s51_s18 = int_to_ptr.vmem [resolvable:$true] %s50_s18  ;;  %s64_s2 = int_to_ptr.vmem [resolvable:$true] %s63_s2 }
   0xd   :  { %56 = dma.hbm_to_vmem [thread:$0]  %s49_s1, 256, %s51_s18, [#allocation6], %s1537_s9, %s1537_s9, %s1538_s10  }
   0xe   :  { %69 = dma.hbm_to_vmem [thread:$0]  %s62_s16, 512, %s64_s2, [#allocation9], %s1537_s9, %s1537_s9, %s1538_s10  }
   0xf   :  { %1526 = dma.done.wait [#allocation3], 256  }
  0x10   :  { %1527 = vsyncadd [#allocation3], 4294967040 }
  0x11   :  { %1528 = dma.done.wait [#allocation6], 512  }
  0x12   :  { %1529 = vsyncadd [#allocation6], 4294966784 }
  0x13   :  { %1530 = dma.done.wait [#allocation9], 512  }
  0x14   :  { %1531 = vsyncadd [#allocation9], 4294966784  ;;  %v95_v0 = vld [vmem:[#allocation7 + $0x8] sm:$0xff]  ;;  %v94_v2 = vld [vmem:[#allocation7] sm:$0xff]  ;;  %vm100_vm0 = vcmask 130048   ;;  %v1542_v11 = vmov 0.0  }
  0x15   :  { %v133_v1 = vld [vmem:[#allocation8 + $0x18] sm:$0xff]  ;;  %121 = vmatpush.msra.mxu0 %v95_v0  ;;  %v132_v3 = vld [vmem:[#allocation8 + $0x10] sm:$0xff]  ;;  %v90_v5 = vld [vmem:[#allocation5] sm:$0xff]  ;;  %s1543_s21 = smov 64   ;;  %vm250_vm9 = vcmask 1041409   ;;  %vm134_vm10 = vcmask 261120  }
  0x16   :  { %150 = vmatpush.msra.mxu1 %v133_v1  ;;  %v88_v4 = vld [vmem:[#allocation2] sm:$0xff]  ;;  %v131_v7 = vld [vmem:[#allocation8 + $0x8] sm:$0xff]  ;;  %268 = vmatpush.msra.mxu2 %v133_v1  ;;  %v130_v8 = vld [vmem:[#allocation8] sm:$0xff]  ;;  %s1545_s22 = smov 96   ;;  %s1546_s23 = smov [#allocation10]  }
  0x17   :  { %v92_v6 = vmul.f32 %v90_v5, %v88_v4  ;;  %391 = vmatpush.msra.mxu3 %v133_v1  ;;  %122 = vmatpush.msra.mxu0 %v94_v2  ;;  %v89_v9 = vld [vmem:[#allocation2 + $0x8] sm:$0xff]  ;;  %v91_v10 = vld [vmem:[#allocation5 + $0x8] sm:$0xff]  ;;  %v1229_v15 = vld [vmem:[%s1873_s4] ss:$0 sm:$0xff]  ;;  %s1544_s4 = smov 32   ;;  %s1143_s24 = sshll.u32 %s1546_s23, 4  ;;  %s1144_s24 = int_to_ptr.vmem [resolvable:$true] %s1143_s24 }
  0x18   :  { %151 = vmatpush.msra.mxu1 %v132_v3  ;;  %269 = vmatpush.msra.mxu2 %v132_v3  ;;  %v93_v12 = vmul.f32 %v91_v10, %v89_v9  ;;  %s1145_s27 = sshll.u32 %s1874_s5, 4  ;;  %s1547_s28 = smov [#allocation11]   ;;  %s1146_s27 = int_to_ptr.hbm [resolvable:$true] %s1145_s27 }
  0x19   :  { %1191 = vmatmul.msk.f32.vlgmr.msra.gmra.mxu0 %vm100_vm0, %v92_v6  ;;  %392 = vmatpush.msra.mxu3 %v132_v3  ;;  %s1157_s29 = sshll.u32 %s1547_s28, 4  ;;  %s1159_s11 = sshll.u32 %s1875_s6, 4  ;;  %s1158_s29 = int_to_ptr.vmem [resolvable:$true] %s1157_s29  ;;  %s1160_s11 = int_to_ptr.hbm [resolvable:$true] %s1159_s11 }
  0x1a   :  { %152 = vmatpush.msra.mxu1 %v131_v7  ;;  %270 = vmatpush.msra.mxu2 %v131_v7  ;;  %s1548_s5 = smov [#allocation13]   ;;  %s1170_s6 = sshll.u32 %s1876_s7, 4  ;;  %s1171_s6 = int_to_ptr.hbm [resolvable:$true] %s1170_s6 }
  0x1b   :  { %891 = vmatpush.msrb.mxu0 %v133_v1  ;;  %393 = vmatpush.msra.mxu3 %v131_v7  ;;  %s1168_s12 = sshll.u32 %s1548_s5, 4  ;;  %s1169_s12 = int_to_ptr.vmem [resolvable:$true] %s1168_s12 }
  0x1c   :  { %153 = vmatpush.msra.mxu1 %v130_v8  ;;  %271 = vmatpush.msra.mxu2 %v130_v8 }
  0x1d   :  { %154 = vmatmul.f32.vlgmr.msra.gmra.mxu1 %v1542_v11  ;;  %394 = vmatpush.msra.mxu3 %v130_v8 }
  0x1e   :  { %516 = vmatpush.msrb.mxu1 %v133_v1  ;;  %641 = vmatpush.msrb.mxu2 %v133_v1 }
  0x1f   :  { %766 = vmatpush.msrb.mxu3 %v133_v1  ;;  %892 = vmatpush.msrb.mxu0 %v132_v3 }
  0x20   :  { %517 = vmatpush.msrb.mxu1 %v132_v3  ;;  %642 = vmatpush.msrb.mxu2 %v132_v3 }
  0x21   :  { %1192 = vmatmul.msk.f32.gmra.mxu0 %vm100_vm0, %v93_v12  ;;  %767 = vmatpush.msrb.mxu3 %v132_v3 }
  0x22   :  { %518 = vmatpush.msrb.mxu1 %v131_v7  ;;  %643 = vmatpush.msrb.mxu2 %v131_v7 }
  0x23   :  { %893 = vmatpush.msrb.mxu0 %v131_v7  ;;  %768 = vmatpush.msrb.mxu3 %v131_v7 }
  0x24   :  { %519 = vmatpush.msrb.mxu1 %v130_v8  ;;  %644 = vmatpush.msrb.mxu2 %v130_v8 }
  0x25   :  { %894 = vmatpush.msrb.mxu0 %v130_v8  ;;  %769 = vmatpush.msrb.mxu3 %v130_v8 }
  0x26   :  { %1016 = vmatpush.msra.mxu1 %v133_v1 }
  0x28   :  { %1017 = vmatpush.msra.mxu1 %v132_v3 }
  0x2a   :  { %1018 = vmatpush.msra.mxu1 %v131_v7 }
  0x2c   :  { %1019 = vmatpush.msra.mxu1 %v130_v8 }
  0x96   :  { %v124_v13 = vpop.f32.mrf.mxu0 }
  0x97   :  { %v1621_v20 = vadd.f32 %v1229_v15, %v124_v13 }
  0x9a   :  { %v155_v14 = vpop.f32.mrf.mxu1 }
  0x9b   :  { %v159_v16 = vrot.slane %v155_v14, 1  ;;  %v162_v21 = vadd.f32 %v155_v14, %v1621_v20 }
  0x9d   :  { %v1193_v25 = vmul.f32 -1.442695, %v162_v21 }
  0x9e   :  { %v127_v17 = vpop.f32.mrf.mxu0 }
  0x9f   :  { %v1618_v18 = vadd.f32 %v1229_v15, %v127_v17 }
  0xa1   :  { %v163_v19 = vadd.f32 %v159_v16, %v1618_v18 }
  0xa3   :  { %1230 = vtanh.f32 %v163_v19  ;;  %v1194_v24 = vmul.f32 -1.442695, %v163_v19 }
  0xa4   :  { %1232 = vtanh.f32 %v162_v21 }
  0xa5   :  { %1234 = vpow2.f32 %v1194_v24 }
  0xa6   :  { %1236 = vpow2.f32 %v1193_v25 }
  0xa9   :  { %v1231_v22 = vpop.eup %1230 }
  0xaa   :  { %210 = vrot.lane.b32.xlu0 %v1231_v22, %s1543_s21  ;;  %v1233_v23 = vpop.eup %1232 }
  0xab   :  { %v1235_v26 = vpop.eup %1234 }
  0xac   :  { %v171_v27 = vadd.f32 1.0, %v1235_v26  ;;  %v1237_v28 = vpop.eup %1236 }
  0xad   :  { %v170_v29 = vadd.f32 1.0, %v1237_v28 }
  0xae   :  { %1238 = vrcp.f32 %v171_v27  ;;  %v198_v38 = vand.u32 2147483648, %v171_v27  ;;  %vm192_vm2 = vweird.f32 %v171_v27  ;;  %v196_v39 = vand.u32 2147483647, %v171_v27 }
  0xaf   :  { %1240 = vrcp.f32 %v170_v29  ;;  %v183_v47 = vand.u32 2147483648, %v170_v29  ;;  %vm177_vm6 = vweird.f32 %v170_v29  ;;  %v181_v48 = vand.u32 2147483647, %v170_v29 }
  0xb0   :  { %v199_v42 = vor.u32 1.1754944e-38, %v198_v38  ;;  %vm197_vm4 = vcmp.eq.f32.partialorder %v196_v39, 8.507059e+37 }
  0xb1   :  { %v184_v50 = vor.u32 1.1754944e-38, %v183_v47  ;;  %vm182_vm8 = vcmp.eq.f32.partialorder %v181_v48, 8.507059e+37 }
  0xb2   :  { %208 = vrot.lane.b32.xlu0 %v1233_v23, %s1543_s21 }
  0xb4   :  { %v1239_v30 = vpop.eup %1238 }
  0xb5   :  { %v188_v31 = vmul.f32 %v1239_v30, %v171_v27  ;;  %v1241_v33 = vpop.eup %1240  ;;  %vm193_vm1 = vweird.f32 %v1239_v30 }
  0xb6   :  { %v173_v35 = vmul.f32 %v1241_v33, %v170_v29  ;;  %vm194_vm3 = vmor %vm192_vm2, %vm193_vm1  ;;  %vm178_vm5 = vweird.f32 %v1241_v33 }
  0xb7   :  { %v189_v32 = vsub.f32 1.0, %v188_v31  ;;  %vm179_vm7 = vmor %vm177_vm6, %vm178_vm5 }
  0xb8   :  { %v174_v37 = vsub.f32 1.0, %v173_v35 }
  0xb9   :  { %v190_v34 = vmul.f32 %v1239_v30, %v189_v32 }
  0xba   :  { %v175_v41 = vmul.f32 %v1241_v33, %v174_v37 }
  0xbb   :  { %v191_v36 = vadd.f32 %v1239_v30, %v190_v34 }
  0xbc   :  { %v176_v46 = vadd.f32 %v1241_v33, %v175_v41 }
  0xbd   :  { %v195_v40 = vsel %vm194_vm3, %v1239_v30, %v191_v36 }
  0xbe   :  { %v200_v44 = vsel %vm197_vm4, %v199_v42, %v195_v40  ;;  %v180_v49 = vsel %vm179_vm7, %v1241_v33, %v176_v46 }
  0xbf   :  { %v185_v52 = vsel %vm182_vm8, %v184_v50, %v180_v49  ;;  %v205_v54 = vmul.f32 0.0, %v200_v44 }
  0xc0   :  { %v204_v57 = vmul.f32 0.0, %v185_v52 }
 0x11c   :  { %v211_v43 = vpop.permute.xlu0 %210 }
 0x11d   :  { %v215_v45 = vmul.f32 %v211_v43, %v200_v44 }
 0x11f   :  { %220 = vrot.lane.b32.xlu1 %v215_v45, %s1544_s4 }
 0x124   :  { %v209_v51 = vpop.permute.xlu0 %208 }
 0x125   :  { %v214_v53 = vmul.f32 %v209_v51, %v185_v52 }
 0x127   :  { %218 = vrot.lane.b32.xlu1 %v214_v53, %s1544_s4 }
 0x191   :  { %v221_v55 = vpop.permute.xlu1 %220 }
 0x192   :  { %v1628_v56 = vadd.f32 %v221_v55, %v205_v54 }
 0x194   :  { %1242 = vtanh.f32 %v1628_v56  ;;  %v325_v43 = vrot.slane %v1628_v56, 7 }
 0x199   :  { %v219_v58 = vpop.permute.xlu1 %218 }
 0x19a   :  { %v1243_v59 = vpop.eup %1242  ;;  %v1631_v60 = vadd.f32 %v219_v58, %v204_v57 }
 0x19b   :  { %232 = vrot.lane.b32.xlu2 %v1243_v59, %s1543_s21 }
 0x19c   :  { %1244 = vtanh.f32 %v1631_v60  ;;  %v324_v48 = vrot.slane %v1631_v60, 7 }
 0x1a2   :  { %v1245_v61 = vpop.eup %1244 }
 0x1a3   :  { %230 = vrot.lane.b32.xlu2 %v1245_v61, %s1543_s21 }
 0x1f5   :  { %v233_v62 = vpop.permute.xlu2 %232 }
 0x1f6   :  { %v1636_v63 = vmul.f32 %v233_v62, %v200_v44 }
 0x1f8   :  { %v249_v1 = vrot.slane %v1636_v63, 7 }
 0x1fd   :  { %v231_v0 = vpop.permute.xlu2 %230 }
 0x1fe   :  { %v1639_v2 = vmul.f32 %v231_v0, %v185_v52 }
 0x200   :  { %v251_v3 = vsel %vm250_vm9, %v249_v1, %v1639_v2 }
 0x201   :  { %252 = vrot.lane.b32.xlu0 %v251_v3, %s1544_s4 }
 0x273   :  { %v253_v4 = vpop.permute.xlu0 %252 }
 0x274   :  { %1195 = vmatmul.msk.f32.vlgmr.msra.gmra.mxu2 %vm134_vm10, %v253_v4 }
 0x2f7   :  { %v273_v5 = vpop.f32.mrf.mxu2 }
 0x2f8   :  { %v277_v6 = vrot.slane %v273_v5, 7  ;;  %v281_v7 = vadd.f32 %v273_v5, %v1618_v18 }
 0x2fa   :  { %v280_v8 = vadd.f32 %v277_v6, %v1621_v20  ;;  %1246 = vtanh.f32 %v281_v7  ;;  %v1197_v11 = vmul.f32 -1.442695, %v281_v7 }
 0x2fc   :  { %1248 = vtanh.f32 %v280_v8  ;;  %v1196_v16 = vmul.f32 -1.442695, %v280_v8 }
 0x2fd   :  { %1250 = vpow2.f32 %v1197_v11 }
 0x300   :  { %v1247_v9 = vpop.eup %1246 }
 0x301   :  { %334 = vrot.lane.b32.xlu2 %v1247_v9, %s1543_s21 }
 0x302   :  { %v1249_v10 = vpop.eup %1248 }
 0x303   :  { %332 = vrot.lane.b32.xlu1 %v1249_v10, %s1543_s21  ;;  %v1251_v12 = vpop.eup %1250 }
 0x304   :  { %v289_v13 = vadd.f32 1.0, %v1251_v12 }
 0x306   :  { %1252 = vrcp.f32 %v289_v13  ;;  %v316_v23 = vand.u32 2147483648, %v289_v13  ;;  %vm310_vm12 = vweird.f32 %v289_v13  ;;  %v314_v25 = vand.u32 2147483647, %v289_v13 }
 0x307   :  { %1254 = vpow2.f32 %v1196_v16 }
 0x308   :  { %v317_v27 = vor.u32 1.1754944e-38, %v316_v23  ;;  %vm315_vm14 = vcmp.eq.f32.partialorder %v314_v25, 8.507059e+37 }
 0x30c   :  { %v1253_v14 = vpop.eup %1252 }
 0x30d   :  { %v306_v15 = vmul.f32 %v1253_v14, %v289_v13  ;;  %v1255_v21 = vpop.eup %1254  ;;  %vm311_vm11 = vweird.f32 %v1253_v14 }
 0x30e   :  { %v288_v24 = vadd.f32 1.0, %v1255_v21  ;;  %vm312_vm13 = vmor %vm310_vm12, %vm311_vm11 }
 0x30f   :  { %v307_v17 = vsub.f32 1.0, %v306_v15 }
 0x310   :  { %1256 = vrcp.f32 %v288_v24  ;;  %v301_v36 = vand.u32 2147483648, %v288_v24  ;;  %vm295_vm0 = vweird.f32 %v288_v24  ;;  %v299_v37 = vand.u32 2147483647, %v288_v24 }
 0x311   :  { %v308_v19 = vmul.f32 %v1253_v14, %v307_v17 }
 0x312   :  { %v302_v39 = vor.u32 1.1754944e-38, %v301_v36  ;;  %vm300_vm2 = vcmp.eq.f32.partialorder %v299_v37, 8.507059e+37 }
 0x313   :  { %v309_v22 = vadd.f32 %v1253_v14, %v308_v19 }
 0x315   :  { %v313_v26 = vsel %vm312_vm13, %v1253_v14, %v309_v22 }
 0x316   :  { %v318_v29 = vsel %vm315_vm14, %v317_v27, %v313_v26  ;;  %v1257_v31 = vpop.eup %1256 }
 0x317   :  { %v291_v32 = vmul.f32 %v1257_v31, %v288_v24  ;;  %vm296_vm15 = vweird.f32 %v1257_v31  ;;  %v329_v44 = vmul.f32 %v325_v43, %v318_v29 }
 0x318   :  { %vm297_vm1 = vmor %vm295_vm0, %vm296_vm15 }
 0x319   :  { %v292_v33 = vsub.f32 1.0, %v291_v32 }
 0x31b   :  { %v293_v34 = vmul.f32 %v1257_v31, %v292_v33 }
 0x31d   :  { %v294_v35 = vadd.f32 %v1257_v31, %v293_v34 }
 0x31f   :  { %v298_v38 = vsel %vm297_vm1, %v1257_v31, %v294_v35 }
 0x320   :  { %v303_v41 = vsel %vm300_vm2, %v302_v39, %v298_v38 }
 0x321   :  { %v328_v49 = vmul.f32 %v324_v48, %v303_v41 }
 0x35b   :  { %v335_v28 = vpop.permute.xlu2 %334 }
 0x35c   :  { %v339_v30 = vmul.f32 %v335_v28, %v318_v29 }
 0x35e   :  { %344 = vrot.lane.b32.xlu1 %v339_v30, %s1544_s4 }
 0x375   :  { %v333_v40 = vpop.permute.xlu1 %332 }
 0x376   :  { %v338_v42 = vmul.f32 %v333_v40, %v303_v41 }
 0x378   :  { %342 = vrot.lane.b32.xlu0 %v338_v42, %s1544_s4 }
 0x3d0   :  { %v345_v45 = vpop.permute.xlu1 %344 }
 0x3d1   :  { %v1652_v46 = vadd.f32 %v345_v45, %v329_v44 }
 0x3d3   :  { %1258 = vtanh.f32 %v1652_v46  ;;  %v449_v38 = vrot.slane %v1652_v46, 7 }
 0x3d9   :  { %v1259_v47 = vpop.eup %1258 }
 0x3da   :  { %356 = vrot.lane.b32.xlu0 %v1259_v47, %s1543_s21 }
 0x3ea   :  { %v343_v50 = vpop.permute.xlu0 %342 }
 0x3eb   :  { %v1657_v51 = vadd.f32 %v343_v50, %v328_v49 }
 0x3ed   :  { %1260 = vtanh.f32 %v1657_v51  ;;  %v448_v37 = vrot.slane %v1657_v51, 7 }
 0x3f3   :  { %v1261_v52 = vpop.eup %1260 }
 0x3f4   :  { %354 = vrot.lane.b32.xlu2 %v1261_v52, %s1543_s21 }
 0x44c   :  { %v357_v53 = vpop.permute.xlu0 %356 }
 0x44d   :  { %v1663_v56 = vmul.f32 %v357_v53, %v318_v29 }
 0x44e   :  { %v355_v54 = vpop.permute.xlu2 %354 }
 0x44f   :  { %v1661_v55 = vmul.f32 %v355_v54, %v303_v41 }
 0x451   :  { %v373_v57 = vrot.slane %v1661_v55, 1 }
 0x453   :  { %v374_v58 = vsel %vm250_vm9, %v1663_v56, %v373_v57 }
 0x454   :  { %375 = vrot.lane.b32.xlu1 %v374_v58, %s1544_s4 }
 0x4c6   :  { %v376_v59 = vpop.permute.xlu1 %375 }
 0x4c7   :  { %1198 = vmatmul.msk.f32.vlgmr.msra.gmra.mxu3 %vm134_vm10, %v376_v59 }
 0x54a   :  { %v396_v60 = vpop.f32.mrf.mxu3 }
 0x54b   :  { %v400_v61 = vrot.slane %v396_v60, 6  ;;  %v401_v62 = vrot.slane %v396_v60, 7 }
 0x54d   :  { %v404_v0 = vadd.f32 %v400_v61, %v1621_v20  ;;  %v405_v1 = vadd.f32 %v401_v62, %v1618_v18 }
 0x54f   :  { %1262 = vtanh.f32 %v404_v0  ;;  %v1199_v5 = vmul.f32 -1.442695, %v404_v0  ;;  %v1200_v9 = vmul.f32 -1.442695, %v405_v1 }
 0x550   :  { %1264 = vtanh.f32 %v405_v1 }
 0x551   :  { %1266 = vpow2.f32 %v1199_v5 }
 0x555   :  { %v1263_v3 = vpop.eup %1262 }
 0x556   :  { %v1265_v4 = vpop.eup %1264  ;;  %456 = vrot.lane.b32.xlu2 %v1263_v3, %s1543_s21 }
 0x557   :  { %458 = vrot.lane.b32.xlu0 %v1265_v4, %s1543_s21  ;;  %v1267_v6 = vpop.eup %1266 }
 0x558   :  { %v412_v7 = vadd.f32 1.0, %v1267_v6 }
 0x55a   :  { %1268 = vrcp.f32 %v412_v7  ;;  %v425_v16 = vand.u32 2147483648, %v412_v7  ;;  %vm419_vm4 = vweird.f32 %v412_v7  ;;  %v423_v17 = vand.u32 2147483647, %v412_v7 }
 0x55b   :  { %1270 = vpow2.f32 %v1200_v9 }
 0x55c   :  { %v426_v21 = vor.u32 1.1754944e-38, %v425_v16  ;;  %vm424_vm6 = vcmp.eq.f32.partialorder %v423_v17, 8.507059e+37 }
 0x560   :  { %v1269_v8 = vpop.eup %1268 }
 0x561   :  { %v415_v10 = vmul.f32 %v1269_v8, %v412_v7  ;;  %v1271_v13 = vpop.eup %1270  ;;  %vm420_vm3 = vweird.f32 %v1269_v8 }
 0x562   :  { %v413_v14 = vadd.f32 1.0, %v1271_v13  ;;  %vm421_vm5 = vmor %vm419_vm4, %vm420_vm3 }
 0x563   :  { %v416_v11 = vsub.f32 1.0, %v415_v10 }
 0x564   :  { %1272 = vrcp.f32 %v413_v14  ;;  %v440_v30 = vand.u32 2147483648, %v413_v14  ;;  %vm434_vm8 = vweird.f32 %v413_v14  ;;  %v438_v31 = vand.u32 2147483647, %v413_v14 }
 0x565   :  { %v417_v12 = vmul.f32 %v1269_v8, %v416_v11 }
 0x566   :  { %v441_v33 = vor.u32 1.1754944e-38, %v440_v30  ;;  %vm439_vm12 = vcmp.eq.f32.partialorder %v438_v31, 8.507059e+37 }
 0x567   :  { %v418_v15 = vadd.f32 %v1269_v8, %v417_v12 }
 0x569   :  { %v422_v19 = vsel %vm421_vm5, %v1269_v8, %v418_v15 }
 0x56a   :  { %v427_v23 = vsel %vm424_vm6, %v426_v21, %v422_v19  ;;  %v1273_v25 = vpop.eup %1272 }
 0x56b   :  { %v430_v26 = vmul.f32 %v1273_v25, %v413_v14  ;;  %vm435_vm7 = vweird.f32 %v1273_v25  ;;  %v452_v39 = vmul.f32 %v448_v37, %v427_v23 }
 0x56c   :  { %vm436_vm11 = vmor %vm434_vm8, %vm435_vm7 }
 0x56d   :  { %v431_v27 = vsub.f32 1.0, %v430_v26 }
 0x56f   :  { %v432_v28 = vmul.f32 %v1273_v25, %v431_v27 }
 0x571   :  { %v433_v29 = vadd.f32 %v1273_v25, %v432_v28 }
 0x573   :  { %v437_v32 = vsel %vm436_vm11, %v1273_v25, %v433_v29 }
 0x574   :  { %v442_v35 = vsel %vm439_vm12, %v441_v33, %v437_v32 }
 0x575   :  { %v453_v40 = vmul.f32 %v449_v38, %v442_v35 }
 0x5b0   :  { %v457_v22 = vpop.permute.xlu2 %456 }
 0x5b1   :  { %v462_v24 = vmul.f32 %v457_v22, %v427_v23 }
 0x5b3   :  { %466 = vrot.lane.b32.xlu1 %v462_v24, %s1544_s4 }
 0x5c9   :  { %v459_v34 = vpop.permute.xlu0 %458 }
 0x5ca   :  { %v463_v36 = vmul.f32 %v459_v34, %v442_v35 }
 0x5cc   :  { %468 = vrot.lane.b32.xlu2 %v463_v36, %s1544_s4 }
 0x625   :  { %v467_v41 = vpop.permute.xlu1 %466 }
 0x626   :  { %v469_v42 = vpop.permute.xlu2 %468  ;;  %v1678_v43 = vadd.f32 %v467_v41, %v452_v39 }
 0x627   :  { %v1680_v44 = vadd.f32 %v469_v42, %v453_v40 }
 0x628   :  { %1274 = vtanh.f32 %v1678_v43  ;;  %v573_v34 = vrot.slane %v1678_v43, 7 }
 0x629   :  { %1276 = vtanh.f32 %v1680_v44  ;;  %v574_v39 = vrot.slane %v1680_v44, 7 }
 0x62e   :  { %v1275_v45 = vpop.eup %1274 }
 0x62f   :  { %v1277_v47 = vpop.eup %1276  ;;  %478 = vrot.lane.b32.xlu0 %v1275_v45, %s1543_s21 }
 0x630   :  { %480 = vrot.lane.b32.xlu1 %v1277_v47, %s1543_s21 }
 0x6a1   :  { %v479_v48 = vpop.permute.xlu0 %478 }
 0x6a2   :  { %v481_v46 = vpop.permute.xlu1 %480  ;;  %v1686_v49 = vmul.f32 %v479_v48, %v427_v23 }
 0x6a3   :  { %v1688_v50 = vmul.f32 %v481_v46, %v442_v35 }
 0x6a4   :  { %v497_v51 = vrot.slane %v1686_v49, 2 }
 0x6a5   :  { %v498_v52 = vrot.slane %v1688_v50, 1 }
 0x6a7   :  { %v499_v53 = vsel %vm250_vm9, %v498_v52, %v497_v51 }
 0x6a8   :  { %500 = vrot.lane.b32.xlu2 %v499_v53, %s1544_s4 }
 0x702   :  { %v501_v54 = vpop.permute.xlu2 %500 }
 0x703   :  { %1201 = vmatmul.msk.f32.vlgmr.msrb.gmra.mxu1 %vm134_vm10, %v501_v54 }
 0x780   :  { %v521_v57 = vpop.f32.mrf.mxu1 }
 0x781   :  { %v525_v58 = vrot.slane %v521_v57, 5  ;;  %v526_v59 = vrot.slane %v521_v57, 6 }
 0x783   :  { %v529_v60 = vadd.f32 %v525_v58, %v1621_v20  ;;  %v530_v61 = vadd.f32 %v526_v59, %v1618_v18 }
 0x785   :  { %1278 = vtanh.f32 %v529_v60  ;;  %v1202_v1 = vmul.f32 -1.442695, %v529_v60  ;;  %v1203_v3 = vmul.f32 -1.442695, %v530_v61 }
 0x786   :  { %1280 = vtanh.f32 %v530_v61 }
 0x787   :  { %1282 = vpow2.f32 %v1202_v1 }
 0x788   :  { %1284 = vpow2.f32 %v1203_v3 }
 0x78b   :  { %v1279_v62 = vpop.eup %1278 }
 0x78c   :  { %v1281_v0 = vpop.eup %1280  ;;  %581 = vrot.lane.b32.xlu0 %v1279_v62, %s1543_s21 }
 0x78d   :  { %583 = vrot.lane.b32.xlu1 %v1281_v0, %s1543_s21  ;;  %v1283_v4 = vpop.eup %1282 }
 0x78e   :  { %v1285_v5 = vpop.eup %1284  ;;  %v537_v6 = vadd.f32 1.0, %v1283_v4 }
 0x78f   :  { %v538_v7 = vadd.f32 1.0, %v1285_v5 }
 0x790   :  { %1286 = vrcp.f32 %v537_v6  ;;  %v550_v19 = vand.u32 2147483648, %v537_v6  ;;  %vm544_vm15 = vweird.f32 %v537_v6  ;;  %v548_v22 = vand.u32 2147483647, %v537_v6 }
 0x791   :  { %1288 = vrcp.f32 %v538_v7  ;;  %v565_v21 = vand.u32 2147483648, %v538_v7  ;;  %vm559_vm0 = vweird.f32 %v538_v7  ;;  %v563_v23 = vand.u32 2147483647, %v538_v7 }
 0x792   :  { %v551_v26 = vor.u32 1.1754944e-38, %v550_v19  ;;  %vm549_vm3 = vcmp.eq.f32.partialorder %v548_v22, 8.507059e+37 }
 0x793   :  { %v566_v27 = vor.u32 1.1754944e-38, %v565_v21  ;;  %vm564_vm4 = vcmp.eq.f32.partialorder %v563_v23, 8.507059e+37 }
 0x796   :  { %v1287_v8 = vpop.eup %1286 }
 0x797   :  { %v1289_v9 = vpop.eup %1288  ;;  %v540_v10 = vmul.f32 %v1287_v8, %v537_v6  ;;  %vm545_vm13 = vweird.f32 %v1287_v8 }
 0x798   :  { %v555_v11 = vmul.f32 %v1289_v9, %v538_v7  ;;  %vm560_vm14 = vweird.f32 %v1289_v9  ;;  %vm546_vm1 = vmor %vm544_vm15, %vm545_vm13 }
 0x799   :  { %v541_v12 = vsub.f32 1.0, %v540_v10  ;;  %vm561_vm2 = vmor %vm559_vm0, %vm560_vm14 }
 0x79a   :  { %v556_v13 = vsub.f32 1.0, %v555_v11 }
 0x79b   :  { %v542_v14 = vmul.f32 %v1287_v8, %v541_v12 }
 0x79c   :  { %v557_v15 = vmul.f32 %v1289_v9, %v556_v13 }
 0x79d   :  { %v543_v16 = vadd.f32 %v1287_v8, %v542_v14 }
 0x79e   :  { %v558_v17 = vadd.f32 %v1289_v9, %v557_v15 }
 0x79f   :  { %v547_v24 = vsel %vm546_vm1, %v1287_v8, %v543_v16 }
 0x7a0   :  { %v562_v25 = vsel %vm561_vm2, %v1289_v9, %v558_v17  ;;  %v552_v29 = vsel %vm549_vm3, %v551_v26, %v547_v24 }
 0x7a1   :  { %v567_v31 = vsel %vm564_vm4, %v566_v27, %v562_v25  ;;  %v577_v35 = vmul.f32 %v573_v34, %v552_v29 }
 0x7a2   :  { %v578_v40 = vmul.f32 %v574_v39, %v567_v31 }
 0x7fe   :  { %v582_v28 = vpop.permute.xlu0 %581 }
 0x7ff   :  { %v584_v30 = vpop.permute.xlu1 %583  ;;  %v587_v32 = vmul.f32 %v582_v28, %v552_v29 }
 0x800   :  { %v588_v33 = vmul.f32 %v584_v30, %v567_v31 }
 0x801   :  { %591 = vrot.lane.b32.xlu2 %v587_v32, %s1544_s4 }
 0x802   :  { %593 = vrot.lane.b32.xlu0 %v588_v33, %s1544_s4 }
 0x85b   :  { %v592_v36 = vpop.permute.xlu2 %591 }
 0x85c   :  { %v1702_v37 = vadd.f32 %v592_v36, %v577_v35 }
 0x85e   :  { %1290 = vtanh.f32 %v1702_v37  ;;  %v698_v39 = vrot.slane %v1702_v37, 7 }
 0x864   :  { %v1291_v38 = vpop.eup %1290 }
 0x865   :  { %603 = vrot.lane.b32.xlu1 %v1291_v38, %s1543_s21 }
 0x874   :  { %v594_v41 = vpop.permute.xlu0 %593 }
 0x875   :  { %v1707_v42 = vadd.f32 %v594_v41, %v578_v40 }
 0x877   :  { %1292 = vtanh.f32 %v1707_v42  ;;  %v699_v33 = vrot.slane %v1707_v42, 7 }
 0x87d   :  { %v1293_v45 = vpop.eup %1292 }
 0x87e   :  { %605 = vrot.lane.b32.xlu2 %v1293_v45, %s1543_s21 }
 0x8d7   :  { %v604_v43 = vpop.permute.xlu1 %603 }
 0x8d8   :  { %v606_v47 = vpop.permute.xlu2 %605  ;;  %v1711_v48 = vmul.f32 %v604_v43, %v552_v29 }
 0x8d9   :  { %v1713_v46 = vmul.f32 %v606_v47, %v567_v31 }
 0x8da   :  { %v622_v51 = vrot.slane %v1711_v48, 3 }
 0x8db   :  { %v623_v52 = vrot.slane %v1713_v46, 2 }
 0x8dd   :  { %v624_v44 = vsel %vm250_vm9, %v623_v52, %v622_v51 }
 0x8de   :  { %625 = vrot.lane.b32.xlu0 %v624_v44, %s1544_s4 }
 0x950   :  { %v626_v53 = vpop.permute.xlu0 %625 }
 0x951   :  { %1204 = vmatmul.msk.f32.vlgmr.msrb.gmra.mxu2 %vm134_vm10, %v626_v53 }
 0x9d4   :  { %v646_v54 = vpop.f32.mrf.mxu2 }
 0x9d5   :  { %v650_v57 = vrot.slane %v646_v54, 4  ;;  %v651_v58 = vrot.slane %v646_v54, 5 }
 0x9d7   :  { %v654_v59 = vadd.f32 %v650_v57, %v1621_v20  ;;  %v655_v60 = vadd.f32 %v651_v58, %v1618_v18 }
 0x9d9   :  { %1294 = vtanh.f32 %v654_v59  ;;  %v1206_v0 = vmul.f32 -1.442695, %v655_v60  ;;  %v1205_v5 = vmul.f32 -1.442695, %v654_v59 }
 0x9da   :  { %1296 = vtanh.f32 %v655_v60 }
 0x9db   :  { %1298 = vpow2.f32 %v1206_v0 }
 0x9df   :  { %v1295_v61 = vpop.eup %1294 }
 0x9e0   :  { %v1297_v62 = vpop.eup %1296  ;;  %706 = vrot.lane.b32.xlu1 %v1295_v61, %s1543_s21 }
 0x9e1   :  { %708 = vrot.lane.b32.xlu2 %v1297_v62, %s1543_s21  ;;  %v1299_v1 = vpop.eup %1298 }
 0x9e2   :  { %v663_v3 = vadd.f32 1.0, %v1299_v1 }
 0x9e4   :  { %1300 = vrcp.f32 %v663_v3  ;;  %v690_v12 = vand.u32 2147483648, %v663_v3  ;;  %vm684_vm6 = vweird.f32 %v663_v3  ;;  %v688_v13 = vand.u32 2147483647, %v663_v3 }
 0x9e5   :  { %1302 = vpow2.f32 %v1205_v5 }
 0x9e6   :  { %v691_v15 = vor.u32 1.1754944e-38, %v690_v12  ;;  %vm689_vm8 = vcmp.eq.f32.partialorder %v688_v13, 8.507059e+37 }
 0x9ea   :  { %v1301_v4 = vpop.eup %1300 }
 0x9eb   :  { %v680_v6 = vmul.f32 %v1301_v4, %v663_v3  ;;  %v1303_v8 = vpop.eup %1302  ;;  %vm685_vm5 = vweird.f32 %v1301_v4 }
 0x9ec   :  { %v662_v10 = vadd.f32 1.0, %v1303_v8  ;;  %vm686_vm7 = vmor %vm684_vm6, %vm685_vm5 }
 0x9ed   :  { %v681_v7 = vsub.f32 1.0, %v680_v6 }
 0x9ee   :  { %1304 = vrcp.f32 %v662_v10  ;;  %v675_v26 = vand.u32 2147483648, %v662_v10  ;;  %vm669_vm12 = vweird.f32 %v662_v10  ;;  %v673_v27 = vand.u32 2147483647, %v662_v10 }
 0x9ef   :  { %v682_v9 = vmul.f32 %v1301_v4, %v681_v7 }
 0x9f0   :  { %v676_v29 = vor.u32 1.1754944e-38, %v675_v26  ;;  %vm674_vm14 = vcmp.eq.f32.partialorder %v673_v27, 8.507059e+37 }
 0x9f1   :  { %v683_v11 = vadd.f32 %v1301_v4, %v682_v9 }
 0x9f3   :  { %v687_v14 = vsel %vm686_vm7, %v1301_v4, %v683_v11 }
 0x9f4   :  { %v692_v17 = vsel %vm689_vm8, %v691_v15, %v687_v14  ;;  %v1305_v19 = vpop.eup %1304 }
 0x9f5   :  { %v665_v22 = vmul.f32 %v1305_v19, %v662_v10  ;;  %vm670_vm11 = vweird.f32 %v1305_v19  ;;  %v703_v34 = vmul.f32 %v699_v33, %v692_v17 }
 0x9f6   :  { %vm671_vm13 = vmor %vm669_vm12, %vm670_vm11 }
 0x9f7   :  { %v666_v23 = vsub.f32 1.0, %v665_v22 }
 0x9f9   :  { %v667_v24 = vmul.f32 %v1305_v19, %v666_v23 }
 0x9fb   :  { %v668_v25 = vadd.f32 %v1305_v19, %v667_v24 }
 0x9fd   :  { %v672_v28 = vsel %vm671_vm13, %v1305_v19, %v668_v25 }
 0x9fe   :  { %v677_v31 = vsel %vm674_vm14, %v676_v29, %v672_v28 }
 0x9ff   :  { %v702_v40 = vmul.f32 %v698_v39, %v677_v31 }
 0xa3b   :  { %v709_v16 = vpop.permute.xlu2 %708 }
 0xa3c   :  { %v713_v21 = vmul.f32 %v709_v16, %v692_v17 }
 0xa3e   :  { %718 = vrot.lane.b32.xlu1 %v713_v21, %s1544_s4 }
 0xa52   :  { %v707_v30 = vpop.permute.xlu1 %706 }
 0xa53   :  { %v712_v32 = vmul.f32 %v707_v30, %v677_v31 }
 0xa55   :  { %716 = vrot.lane.b32.xlu0 %v712_v32, %s1544_s4 }
 0xab0   :  { %v719_v35 = vpop.permute.xlu1 %718 }
 0xab1   :  { %v1727_v36 = vadd.f32 %v719_v35, %v703_v34 }
 0xab3   :  { %1306 = vtanh.f32 %v1727_v36  ;;  %v824_v35 = vrot.slane %v1727_v36, 7 }
 0xab9   :  { %v1307_v38 = vpop.eup %1306 }
 0xaba   :  { %730 = vrot.lane.b32.xlu0 %v1307_v38, %s1543_s21 }
 0xac7   :  { %v717_v41 = vpop.permute.xlu0 %716 }
 0xac8   :  { %v1732_v45 = vadd.f32 %v717_v41, %v702_v40 }
 0xaca   :  { %1308 = vtanh.f32 %v1732_v45  ;;  %v823_v34 = vrot.slane %v1732_v45, 7 }
 0xad0   :  { %v1309_v43 = vpop.eup %1308 }
 0xad1   :  { %728 = vrot.lane.b32.xlu2 %v1309_v43, %s1543_s21 }
 0xb2b   :  { %v729_v42 = vpop.permute.xlu2 %728 }
 0xb2c   :  { %v731_v47 = vpop.permute.xlu0 %730  ;;  %v1736_v51 = vmul.f32 %v729_v42, %v677_v31 }
 0xb2d   :  { %v1738_v52 = vmul.f32 %v731_v47, %v692_v17 }
 0xb2e   :  { %v747_v44 = vrot.slane %v1736_v51, 4 }
 0xb2f   :  { %v748_v53 = vrot.slane %v1738_v52, 3 }
 0xb31   :  { %v749_v37 = vsel %vm250_vm9, %v748_v53, %v747_v44 }
 0xb32   :  { %750 = vrot.lane.b32.xlu1 %v749_v37, %s1544_s4 }
 0xba4   :  { %v751_v54 = vpop.permute.xlu1 %750 }
 0xba5   :  { %1207 = vmatmul.msk.f32.vlgmr.msrb.gmra.mxu3 %vm134_vm10, %v751_v54 }
 0xc28   :  { %v771_v57 = vpop.f32.mrf.mxu3 }
 0xc29   :  { %v775_v58 = vrot.slane %v771_v57, 3  ;;  %v776_v59 = vrot.slane %v771_v57, 4 }
 0xc2b   :  { %v779_v60 = vadd.f32 %v775_v58, %v1621_v20  ;;  %v780_v61 = vadd.f32 %v776_v59, %v1618_v18 }
 0xc2d   :  { %1310 = vtanh.f32 %v779_v60  ;;  %v1208_v1 = vmul.f32 -1.442695, %v779_v60  ;;  %v1209_v6 = vmul.f32 -1.442695, %v780_v61 }
 0xc2e   :  { %1312 = vtanh.f32 %v780_v61 }
 0xc2f   :  { %1314 = vpow2.f32 %v1208_v1 }
 0xc33   :  { %v1311_v62 = vpop.eup %1310 }
 0xc34   :  { %v1313_v0 = vpop.eup %1312  ;;  %831 = vrot.lane.b32.xlu2 %v1311_v62, %s1543_s21 }
 0xc35   :  { %833 = vrot.lane.b32.xlu0 %v1313_v0, %s1543_s21  ;;  %v1315_v3 = vpop.eup %1314 }
 0xc36   :  { %v787_v4 = vadd.f32 1.0, %v1315_v3 }
 0xc38   :  { %1316 = vrcp.f32 %v787_v4  ;;  %v800_v13 = vand.u32 2147483648, %v787_v4  ;;  %vm794_vm0 = vweird.f32 %v787_v4  ;;  %v798_v14 = vand.u32 2147483647, %v787_v4 }
 0xc39   :  { %1318 = vpow2.f32 %v1209_v6 }
 0xc3a   :  { %v801_v16 = vor.u32 1.1754944e-38, %v800_v13  ;;  %vm799_vm2 = vcmp.eq.f32.partialorder %v798_v14, 8.507059e+37 }
 0xc3e   :  { %v1317_v5 = vpop.eup %1316 }
 0xc3f   :  { %v790_v7 = vmul.f32 %v1317_v5, %v787_v4  ;;  %v1319_v10 = vpop.eup %1318  ;;  %vm795_vm15 = vweird.f32 %v1317_v5 }
 0xc40   :  { %v788_v11 = vadd.f32 1.0, %v1319_v10  ;;  %vm796_vm1 = vmor %vm794_vm0, %vm795_vm15 }
 0xc41   :  { %v791_v8 = vsub.f32 1.0, %v790_v7 }
 0xc42   :  { %1320 = vrcp.f32 %v788_v11  ;;  %v815_v27 = vand.u32 2147483648, %v788_v11  ;;  %vm809_vm4 = vweird.f32 %v788_v11  ;;  %v813_v28 = vand.u32 2147483647, %v788_v11 }
 0xc43   :  { %v792_v9 = vmul.f32 %v1317_v5, %v791_v8 }
 0xc44   :  { %v816_v30 = vor.u32 1.1754944e-38, %v815_v27  ;;  %vm814_vm6 = vcmp.eq.f32.partialorder %v813_v28, 8.507059e+37 }
 0xc45   :  { %v793_v12 = vadd.f32 %v1317_v5, %v792_v9 }
 0xc47   :  { %v797_v15 = vsel %vm796_vm1, %v1317_v5, %v793_v12 }
 0xc48   :  { %v802_v19 = vsel %vm799_vm2, %v801_v16, %v797_v15  ;;  %v1321_v22 = vpop.eup %1320 }
 0xc49   :  { %v805_v23 = vmul.f32 %v1321_v22, %v788_v11  ;;  %vm810_vm3 = vweird.f32 %v1321_v22  ;;  %v827_v38 = vmul.f32 %v823_v34, %v802_v19 }
 0xc4a   :  { %vm811_vm5 = vmor %vm809_vm4, %vm810_vm3 }
 0xc4b   :  { %v806_v24 = vsub.f32 1.0, %v805_v23 }
 0xc4d   :  { %v807_v25 = vmul.f32 %v1321_v22, %v806_v24 }
 0xc4f   :  { %v808_v26 = vadd.f32 %v1321_v22, %v807_v25 }
 0xc51   :  { %v812_v29 = vsel %vm811_vm5, %v1321_v22, %v808_v26 }
 0xc52   :  { %v817_v32 = vsel %vm814_vm6, %v816_v30, %v812_v29 }
 0xc53   :  { %v828_v39 = vmul.f32 %v824_v35, %v817_v32 }
 0xc8e   :  { %v832_v17 = vpop.permute.xlu2 %831 }
 0xc8f   :  { %v837_v21 = vmul.f32 %v832_v17, %v802_v19 }
 0xc91   :  { %841 = vrot.lane.b32.xlu1 %v837_v21, %s1544_s4 }
 0xca7   :  { %v834_v31 = vpop.permute.xlu0 %833 }
 0xca8   :  { %v838_v33 = vmul.f32 %v834_v31, %v817_v32 }
 0xcaa   :  { %843 = vrot.lane.b32.xlu2 %v838_v33, %s1544_s4 }
 0xd03   :  { %v842_v40 = vpop.permute.xlu1 %841 }
 0xd04   :  { %v844_v41 = vpop.permute.xlu2 %843  ;;  %v1753_v43 = vadd.f32 %v842_v40, %v827_v38 }
 0xd05   :  { %v1755_v42 = vadd.f32 %v844_v41, %v828_v39 }
 0xd06   :  { %1322 = vtanh.f32 %v1753_v43  ;;  %v948_v39 = vrot.slane %v1753_v43, 7 }
 0xd07   :  { %1324 = vtanh.f32 %v1755_v42 }
 0xd0c   :  { %v1323_v47 = vpop.eup %1322 }
 0xd0d   :  { %v1325_v44 = vpop.eup %1324  ;;  %853 = vrot.lane.b32.xlu0 %v1323_v47, %s1543_s21 }
 0xd0e   :  { %855 = vrot.lane.b32.xlu1 %v1325_v44, %s1543_s21 }
 0xd7f   :  { %v854_v45 = vpop.permute.xlu0 %853 }
 0xd80   :  { %v856_v36 = vpop.permute.xlu1 %855  ;;  %v1761_v53 = vmul.f32 %v854_v45, %v802_v19  ;;  %v949_v45 = vrot.slane %v1755_v42, 7 }
 0xd81   :  { %v1763_v37 = vmul.f32 %v856_v36, %v817_v32 }
 0xd82   :  { %v872_v54 = vrot.slane %v1761_v53, 5 }
 0xd83   :  { %v873_v57 = vrot.slane %v1763_v37, 4 }
 0xd85   :  { %v874_v58 = vsel %vm250_vm9, %v873_v57, %v872_v54 }
 0xd86   :  { %875 = vrot.lane.b32.xlu2 %v874_v58, %s1544_s4 }
 0xde0   :  { %v876_v59 = vpop.permute.xlu2 %875 }
 0xde1   :  { %1210 = vmatmul.msk.f32.vlgmr.msrb.gmra.mxu0 %vm134_vm10, %v876_v59 }
 0xe5e   :  { %v896_v60 = vpop.f32.mrf.mxu0 }
 0xe5f   :  { %v900_v61 = vrot.slane %v896_v60, 2  ;;  %v901_v62 = vrot.slane %v896_v60, 3 }
 0xe61   :  { %v904_v0 = vadd.f32 %v900_v61, %v1621_v20  ;;  %v905_v1 = vadd.f32 %v901_v62, %v1618_v18 }
 0xe63   :  { %1326 = vtanh.f32 %v904_v0  ;;  %v1211_v5 = vmul.f32 -1.442695, %v904_v0  ;;  %v1212_v6 = vmul.f32 -1.442695, %v905_v1 }
 0xe64   :  { %1328 = vtanh.f32 %v905_v1 }
 0xe65   :  { %1330 = vpow2.f32 %v1211_v5 }
 0xe66   :  { %1332 = vpow2.f32 %v1212_v6 }
 0xe69   :  { %v1327_v3 = vpop.eup %1326 }
 0xe6a   :  { %v1329_v4 = vpop.eup %1328  ;;  %956 = vrot.lane.b32.xlu0 %v1327_v3, %s1543_s21 }
 0xe6b   :  { %958 = vrot.lane.b32.xlu1 %v1329_v4, %s1543_s21  ;;  %v1331_v7 = vpop.eup %1330 }
 0xe6c   :  { %v1333_v8 = vpop.eup %1332  ;;  %v912_v9 = vadd.f32 1.0, %v1331_v7 }
 0xe6d   :  { %v913_v10 = vadd.f32 1.0, %v1333_v8 }
 0xe6e   :  { %1334 = vrcp.f32 %v912_v9  ;;  %v925_v23 = vand.u32 2147483648, %v912_v9  ;;  %vm919_vm11 = vweird.f32 %v912_v9  ;;  %v923_v25 = vand.u32 2147483647, %v912_v9 }
 0xe6f   :  { %1336 = vrcp.f32 %v913_v10  ;;  %v940_v24 = vand.u32 2147483648, %v913_v10  ;;  %vm934_vm12 = vweird.f32 %v913_v10  ;;  %v938_v26 = vand.u32 2147483647, %v913_v10 }
 0xe70   :  { %v926_v29 = vor.u32 1.1754944e-38, %v925_v23  ;;  %vm924_vm15 = vcmp.eq.f32.partialorder %v923_v25, 8.507059e+37 }
 0xe71   :  { %v941_v30 = vor.u32 1.1754944e-38, %v940_v24  ;;  %vm939_vm0 = vcmp.eq.f32.partialorder %v938_v26, 8.507059e+37 }
 0xe74   :  { %v1335_v11 = vpop.eup %1334 }
 0xe75   :  { %v1337_v12 = vpop.eup %1336  ;;  %v915_v13 = vmul.f32 %v1335_v11, %v912_v9  ;;  %vm920_vm7 = vweird.f32 %v1335_v11 }
 0xe76   :  { %v930_v14 = vmul.f32 %v1337_v12, %v913_v10  ;;  %vm935_vm8 = vweird.f32 %v1337_v12  ;;  %vm921_vm13 = vmor %vm919_vm11, %vm920_vm7  ;;  %vm246_vm7 = vcmask 253952   ;;  %vm619_vm11 = vcmask 257027  }
 0xe77   :  { %v916_v15 = vsub.f32 1.0, %v915_v13  ;;  %vm936_vm14 = vmor %vm934_vm12, %vm935_vm8  ;;  %vm370_vm8 = vcmask 254977   ;;  %vm869_vm12 = vcmask 259077  }
 0xe78   :  { %v931_v16 = vsub.f32 1.0, %v930_v14 }
 0xe79   :  { %v917_v17 = vmul.f32 %v1335_v11, %v916_v15 }
 0xe7a   :  { %v932_v19 = vmul.f32 %v1337_v12, %v931_v16 }
 0xe7b   :  { %v918_v21 = vadd.f32 %v1335_v11, %v917_v17 }
 0xe7c   :  { %v933_v22 = vadd.f32 %v1337_v12, %v932_v19 }
 0xe7d   :  { %v922_v27 = vsel %vm921_vm13, %v1335_v11, %v918_v21  ;;  %vm994_vm13 = vcmask 260102  }
 0xe7e   :  { %v937_v28 = vsel %vm936_vm14, %v1337_v12, %v933_v22  ;;  %v927_v32 = vsel %vm924_vm15, %v926_v29, %v922_v27  ;;  %vm494_vm14 = vcmask 256002   ;;  %vm744_vm15 = vcmask 258052  }
 0xe7f   :  { %v942_v34 = vsel %vm939_vm0, %v941_v30, %v937_v28  ;;  %v952_v40 = vmul.f32 %v948_v39, %v927_v32  ;;  %vm1119_vm0 = vcmask 261127  }
 0xe80   :  { %v953_v36 = vmul.f32 %v949_v45, %v942_v34 }
 0xedc   :  { %v957_v31 = vpop.permute.xlu0 %956 }
 0xedd   :  { %v959_v33 = vpop.permute.xlu1 %958  ;;  %v962_v35 = vmul.f32 %v957_v31, %v927_v32 }
 0xede   :  { %v963_v38 = vmul.f32 %v959_v33, %v942_v34 }
 0xedf   :  { %966 = vrot.lane.b32.xlu2 %v962_v35, %s1544_s4 }
 0xee0   :  { %968 = vrot.lane.b32.xlu0 %v963_v38, %s1544_s4 }
 0xf39   :  { %v967_v41 = vpop.permute.xlu2 %966 }
 0xf3a   :  { %v1777_v47 = vadd.f32 %v967_v41, %v952_v40 }
 0xf3c   :  { %1338 = vtanh.f32 %v1777_v47 }
 0xf42   :  { %v1339_v44 = vpop.eup %1338 }
 0xf43   :  { %978 = vrot.lane.b32.xlu1 %v1339_v44, %s1543_s21 }
 0xf52   :  { %v969_v54 = vpop.permute.xlu0 %968 }
 0xf53   :  { %v1782_v57 = vadd.f32 %v969_v54, %v953_v36 }
 0xf55   :  { %1340 = vtanh.f32 %v1782_v57 }
 0xf5b   :  { %v1341_v58 = vpop.eup %1340 }
 0xf5c   :  { %980 = vrot.lane.b32.xlu2 %v1341_v58, %s1543_s21 }
 0xfb5   :  { %v979_v43 = vpop.permute.xlu1 %978 }
 0xfb6   :  { %v981_v59 = vpop.permute.xlu2 %980  ;;  %v1786_v60 = vmul.f32 %v979_v43, %v927_v32 }
 0xfb7   :  { %v1788_v61 = vmul.f32 %v981_v59, %v942_v34 }
 0xfb8   :  { %v997_v62 = vrot.slane %v1786_v60, 6 }
 0xfb9   :  { %v998_v0 = vrot.slane %v1788_v61, 5 }
 0xfbb   :  { %v999_v42 = vsel %vm250_vm9, %v998_v0, %v997_v62 }
 0xfbc   :  { %1000 = vrot.lane.b32.xlu0 %v999_v42, %s1544_s4 }
0x102e   :  { %v1001_v1 = vpop.permute.xlu0 %1000 }
0x102f   :  { %1213 = vmatmul.msk.f32.vlgmr.msra.gmra.mxu1 %vm134_vm10, %v1001_v1 }
0x10ac   :  { %v1021_v3 = vpop.f32.mrf.mxu1 }
0x10ad   :  { %v1025_v4 = vrot.slane %v1021_v3, 1  ;;  %v1026_v5 = vrot.slane %v1021_v3, 2 }
0x10af   :  { %v1029_v6 = vadd.f32 %v1025_v4, %v1621_v20  ;;  %v1030_v7 = vadd.f32 %v1026_v5, %v1618_v18 }
0x10b1   :  { %1342 = vtanh.f32 %v1029_v6  ;;  %v1214_v10 = vmul.f32 -1.442695, %v1029_v6  ;;  %v1215_v14 = vmul.f32 -1.442695, %v1030_v7 }
0x10b2   :  { %1344 = vtanh.f32 %v1030_v7 }
0x10b3   :  { %1346 = vpow2.f32 %v1214_v10 }
0x10b7   :  { %v1343_v8 = vpop.eup %1342 }
0x10b8   :  { %v1345_v9 = vpop.eup %1344  ;;  %1081 = vrot.lane.b32.xlu2 %v1343_v8, %s1543_s21 }
0x10b9   :  { %1083 = vrot.lane.b32.xlu1 %v1345_v9, %s1543_s21  ;;  %v1347_v11 = vpop.eup %1346 }
0x10ba   :  { %v1037_v12 = vadd.f32 1.0, %v1347_v11 }
0x10bc   :  { %1348 = vrcp.f32 %v1037_v12  ;;  %v1050_v21 = vand.u32 2147483648, %v1037_v12  ;;  %vm1044_vm10 = vweird.f32 %v1037_v12  ;;  %v1048_v22 = vand.u32 2147483647, %v1037_v12 }
0x10bd   :  { %1350 = vpow2.f32 %v1215_v14 }
0x10be   :  { %v1051_v24 = vor.u32 1.1754944e-38, %v1050_v21  ;;  %vm1049_vm2 = vcmp.eq.f32.partialorder %v1048_v22, 8.507059e+37 }
0x10c2   :  { %v1349_v13 = vpop.eup %1348 }
0x10c3   :  { %v1040_v15 = vmul.f32 %v1349_v13, %v1037_v12  ;;  %v1351_v18 = vpop.eup %1350  ;;  %vm1045_vm9 = vweird.f32 %v1349_v13 }
0x10c4   :  { %v1038_v17 = vadd.f32 1.0, %v1351_v18  ;;  %vm1046_vm1 = vmor %vm1044_vm10, %vm1045_vm9 }
0x10c5   :  { %v1041_v20 = vsub.f32 1.0, %v1040_v15 }
0x10c6   :  { %1352 = vrcp.f32 %v1038_v17  ;;  %v1065_v33 = vand.u32 2147483648, %v1038_v17  ;;  %vm1059_vm4 = vweird.f32 %v1038_v17  ;;  %v1063_v34 = vand.u32 2147483647, %v1038_v17 }
0x10c7   :  { %v1042_v16 = vmul.f32 %v1349_v13, %v1041_v20 }
0x10c8   :  { %v1066_v38 = vor.u32 1.1754944e-38, %v1065_v33  ;;  %vm1064_vm6 = vcmp.eq.f32.partialorder %v1063_v34, 8.507059e+37 }
0x10c9   :  { %v1043_v19 = vadd.f32 %v1349_v13, %v1042_v16 }
0x10cb   :  { %v1047_v23 = vsel %vm1046_vm1, %v1349_v13, %v1043_v19 }
0x10cc   :  { %v1799_v26 = vsel %vm1049_vm2, %v1051_v24, %v1047_v23  ;;  %v1353_v28 = vpop.eup %1352 }
0x10cd   :  { %v1055_v29 = vmul.f32 %v1353_v28, %v1038_v17  ;;  %vm1060_vm3 = vweird.f32 %v1353_v28 }
0x10ce   :  { %vm1061_vm5 = vmor %vm1059_vm4, %vm1060_vm3 }
0x10cf   :  { %v1056_v30 = vsub.f32 1.0, %v1055_v29 }
0x10d1   :  { %v1057_v31 = vmul.f32 %v1353_v28, %v1056_v30 }
0x10d3   :  { %v1058_v32 = vadd.f32 %v1353_v28, %v1057_v31 }
0x10d5   :  { %v1062_v35 = vsel %vm1061_vm5, %v1353_v28, %v1058_v32 }
0x10d6   :  { %v1067_v40 = vsel %vm1064_vm6, %v1066_v38, %v1062_v35 }
0x1112   :  { %v1082_v25 = vpop.permute.xlu2 %1081 }
0x1113   :  { %v1087_v27 = vmul.f32 %v1082_v25, %v1799_v26 }
0x1115   :  { %1091 = vrot.lane.b32.xlu1 %v1087_v27, %s1544_s4 }
0x111d   :  { %240 = vrot.lane.b32.xlu1 %v1639_v2, %s1544_s4  ;;  %v1073_v2 = vrot.slane %v1777_v47, 7 }
0x1125   :  { %366 = vrot.lane.b32.xlu1 %v1663_v56, %s1544_s4  ;;  %v1077_v56 = vmul.f32 %v1073_v2, %v1799_v26 }
0x112b   :  { %v1084_v39 = vpop.permute.xlu1 %1083 }
0x112c   :  { %v1088_v41 = vmul.f32 %v1084_v39, %v1067_v40 }
0x112d   :  { %615 = vrot.lane.b32.xlu1 %v1713_v46, %s1544_s4 }
0x112e   :  { %1093 = vrot.lane.b32.xlu0 %v1088_v41, %s1544_s4 }
0x1135   :  { %863 = vrot.lane.b32.xlu1 %v1761_v53, %s1544_s4  ;;  %v1074_v53 = vrot.slane %v1782_v57, 7 }
0x1137   :  { %v1078_v47 = vmul.f32 %v1074_v53, %v1067_v40 }
0x113d   :  { %990 = vrot.lane.b32.xlu1 %v1788_v61, %s1544_s4 }
0x1187   :  { %v1092_v44 = vpop.permute.xlu1 %1091 }
0x1188   :  { %v1097_v45 = vadd.f32 %v1092_v44, %v1077_v56 }
0x118a   :  { %1354 = vtanh.f32 %v1097_v45 }
0x118f   :  { %v241_v36 = vpop.permute.xlu1 %240 }
0x1190   :  { %v1355_v54 = vpop.eup %1354  ;;  %247 = vst.msk [vmem:[#allocation10] sm:$0x1] %vm246_vm7, %v241_v36 }
0x1191   :  { %1103 = vrot.lane.b32.xlu0 %v1355_v54, %s1543_s21 }
0x1197   :  { %v367_v46 = vpop.permute.xlu1 %366 }
0x1198   :  { %372 = vst.msk [vmem:[#allocation10 + $0x8] sm:$0x2] %vm370_vm8, %v367_v46 }
0x1199   :  { %364 = vrot.lane.b32.xlu0 %v1661_v55, %s1544_s4 }
0x119f   :  { %v616_v58 = vpop.permute.xlu1 %615 }
0x11a0   :  { %v1094_v43 = vpop.permute.xlu0 %1093  ;;  %621 = vst.msk [vmem:[#allocation10 + $0x8] sm:$0x8] %vm619_vm11, %v616_v58 }
0x11a1   :  { %v1098_v59 = vadd.f32 %v1094_v43, %v1078_v47  ;;  %490 = vrot.lane.b32.xlu0 %v1688_v50, %s1544_s4 }
0x11a3   :  { %1356 = vtanh.f32 %v1098_v59 }
0x11a7   :  { %v864_v61 = vpop.permute.xlu1 %863 }
0x11a8   :  { %870 = vst.msk [vmem:[#allocation10] sm:$0x20] %vm869_vm12, %v864_v61 }
0x11a9   :  { %v1357_v62 = vpop.eup %1356  ;;  %613 = vrot.lane.b32.xlu0 %v1711_v48, %s1544_s4 }
0x11aa   :  { %1105 = vrot.lane.b32.xlu2 %v1357_v62, %s1543_s21 }
0x11af   :  { %v991_v55 = vpop.permute.xlu1 %990 }
0x11b0   :  { %996 = vst.msk [vmem:[#allocation10 + $0x8] sm:$0x40] %vm994_vm13, %v991_v55 }
0x11b1   :  { %740 = vrot.lane.b32.xlu0 %v1738_v52, %s1544_s4 }
0x11b2   :  { %242 = vrot.lane.b32.xlu2 %v1636_v63, %s1544_s4 }
0x11b9   :  { %988 = vrot.lane.b32.xlu0 %v1786_v60, %s1544_s4 }
0x11ba   :  { %488 = vrot.lane.b32.xlu2 %v1686_v49, %s1544_s4  ;;  %v1130_v49 = vrot.slane %v1098_v59, 7 }
0x11c1   :  { %1131 = vrot.lane.b32.xlu0 %v1097_v45, %s1545_s22 }
0x11c2   :  { %738 = vrot.lane.b32.xlu2 %v1736_v51, %s1544_s4 }
0x11ca   :  { %865 = vrot.lane.b32.xlu2 %v1763_v37, %s1544_s4 }
0x1203   :  { %v1104_v50 = vpop.permute.xlu0 %1103 }
0x1204   :  { %v1106_v48 = vpop.permute.xlu2 %1105  ;;  %v1109_v52 = vmul.f32 %v1104_v50, %v1799_v26 }
0x1205   :  { %v1110_v57 = vmul.f32 %v1106_v48, %v1067_v40 }
0x1206   :  { %1113 = vrot.lane.b32.xlu1 %v1109_v52, %s1544_s4 }
0x1207   :  { %v1122_v63 = vrot.slane %v1110_v57, 7 }
0x1209   :  { %1123 = vrot.lane.b32.xlu2 %v1122_v63, %s1544_s4 }
0x120b   :  { %v365_v60 = vpop.permute.xlu0 %364 }
0x120c   :  { %v243_v0 = vpop.permute.xlu2 %242  ;;  %371 = vst.msk [vmem:[#allocation10] sm:$0x2] %vm370_vm8, %v365_v60 }
0x120d   :  { %248 = vst.msk [vmem:[#allocation10 + $0x8] sm:$0x1] %vm246_vm7, %v243_v0 }
0x120e   :  { %1133 = vrot.lane.b32.xlu1 %v1130_v49, %s1545_s22 }
0x1211   :  { %1115 = vrot.lane.b32.xlu2 %v1110_v57, %s1544_s4 }
0x1213   :  { %v491_v51 = vpop.permute.xlu0 %490 }
0x1214   :  { %v489_v37 = vpop.permute.xlu2 %488  ;;  %496 = vst.msk [vmem:[#allocation10 + $0x8] sm:$0x4] %vm494_vm14, %v491_v51 }
0x1215   :  { %495 = vst.msk [vmem:[#allocation10] sm:$0x4] %vm494_vm14, %v489_v37 }
0x121b   :  { %v614_v42 = vpop.permute.xlu0 %613 }
0x121c   :  { %v739_v1 = vpop.permute.xlu2 %738  ;;  %620 = vst.msk [vmem:[#allocation10] sm:$0x8] %vm619_vm11, %v614_v42 }
0x121d   :  { %745 = vst.msk [vmem:[#allocation10] sm:$0x10] %vm744_vm15, %v739_v1 }
0x1223   :  { %v741_v3 = vpop.permute.xlu0 %740 }
0x1224   :  { %v866_v4 = vpop.permute.xlu2 %865  ;;  %746 = vst.msk [vmem:[#allocation10 + $0x8] sm:$0x10] %vm744_vm15, %v741_v3 }
0x1225   :  { %871 = vst.msk [vmem:[#allocation10 + $0x8] sm:$0x20] %vm869_vm12, %v866_v4 }
0x122b   :  { %v989_v5 = vpop.permute.xlu0 %988 }
0x122c   :  { %995 = vst.msk [vmem:[#allocation10] sm:$0x40] %vm994_vm13, %v989_v5 }
0x1233   :  { %v1132_v6 = vpop.permute.xlu0 %1131 }
0x1234   :  { %1137 = vst.msk [vmem:[#allocation13 - $0x7] sm:$0x80] %vm1119_vm0, %v1132_v6 }
0x1263   :  { %v1124_v7 = vpop.permute.xlu2 %1123 }
0x1264   :  { %1127 = vst.msk [vmem:[#allocation11 + $0x1] sm:$0x1] %vm246_vm7, %v1124_v7 }
0x126b   :  { %v1116_v8 = vpop.permute.xlu2 %1115 }
0x126c   :  { %1121 = vst.msk [vmem:[#allocation10 + $0x8] sm:$0x80] %vm1119_vm0, %v1116_v8 }
0x1278   :  { %v1114_v9 = vpop.permute.xlu1 %1113 }
0x1279   :  { %1120 = vst.msk [vmem:[#allocation10] sm:$0x80] %vm1119_vm0, %v1114_v9 }
0x127a   :  { %1126 = vst.msk [vmem:[#allocation11 - $0x7] sm:$0x80] %vm1119_vm0, %v1114_v9  ;;  %1151 = dma.vmem_to_hbm [thread:$0]  %s1144_s24, 256, %s1146_s27, [#allocation4], %s1537_s9, %s1537_s9, %s1538_s10  }
0x127b   :  { %1162 = dma.vmem_to_hbm [thread:$0]  %s1158_s29, 32, %s1160_s11, [#allocation12]  }
0x1280   :  { %v1134_v10 = vpop.permute.xlu1 %1133 }
0x1281   :  { %1138 = vst.msk [vmem:[#allocation13 + $0x1] sm:$0x1] %vm246_vm7, %v1134_v10 }
0x1282   :  { %1173 = dma.vmem_to_hbm [thread:$0]  %s1169_s12, 32, %s1171_s6, [#allocation12]  }
0x1283   :  { %1532 = dma.done.wait [#allocation4], 256  }
0x1284   :  { %1533 = vsyncadd [#allocation4], 4294967040 }
0x1285   :  { %1534 = dma.done.wait [#allocation12], 64  }
0x1286   :  { %1535 = vsyncadd [#allocation12], 4294967232 }
0x1287   :  { %1186 = vsyncpa [#allocation3], 1 }
0x1288   :  { %1187 = vsyncpa [#allocation6], 1 }
0x1289   :  { %1188 = vsyncpa [#allocation9], 1 }
0x128a   :  { %1189 = vsyncpa [#allocation4], 1 }
0x128b   :  { %1190 = vsyncpa [#allocation12], 1 }

</bundles_post_ra>
